<compile_context>
chip_gen: v6e
topology: v6e:2x2x1
jax: 0.10.0
libtpu: 0.0.40
codegen_flags: <defaults>
</compile_context>

<pallas_src>
import math

import jax
import jax.numpy as jnp
from jax.experimental import pallas as pl
from jax.experimental.pallas import tpu as pltpu


def _round_up(x, m):
    return ((x + m - 1) // m) * m


# ----------------------------------------------------------------------------
# Pallas kernel: one TransformerEncoderLayer (post-norm), block_b batch
# elements per grid step; emits the post-LN2 cls embedding (block_b, D).
# ----------------------------------------------------------------------------
def tx_scene_kernel(xf_ref, xc_ref, wq_ref, wkv_ref, wo_ref, w1_ref, w2_ref,
                    pvec_ref, red_ref, expm_ref, out_ref):
    Bt, Lp, _ = xf_ref.shape
    D = wq_ref.shape[0]
    nhead = red_ref.shape[1]
    FF = w1_ref.shape[1]
    hd = D // nhead
    scale = 1.0 / math.sqrt(hd)
    f32 = jnp.float32
    cdt = w1_ref.dtype                      # bf16 compute dtype for MXU inputs

    # Activation stream (bf16): columns [0:D] = [cls | x+pos | pad] features,
    # columns [D:D+nhead] = key-padding bias (0 valid / -1e9 masked) replicated
    # across heads so it adds directly onto the (Bt, Lp, nhead) scores.
    xf = xf_ref[...]                        # (Bt, Lp, D+nhead) bf16
    act = xf[:, :, :D]                      # (Bt, Lp, D) bf16
    mbias = xf[:, :, D:D + nhead].astype(f32)   # (Bt, Lp, nhead) f32
    act2 = act.reshape(Bt * Lp, D)          # layout no-op (Lp % 16 == 0)

    xc = xc_ref[...]                        # (Bt, D) f32 cls rows (residual path)

    # packed biases / LayerNorm params (one row each, lane-prefix slices)
    b_q = pvec_ref[0:1, :D]
    b_kv = pvec_ref[1:2, :2 * D]
    b_o = pvec_ref[2:3, :D]
    g1 = pvec_ref[3:4, :D]
    be1 = pvec_ref[4:5, :D]
    b_1 = pvec_ref[5:6, :FF]
    b_2 = pvec_ref[6:7, :D]
    g2 = pvec_ref[7:8, :D]
    be2 = pvec_ref[8:9, :D]

    # ---- projections: Q only for the cls row, fused K|V for all rows ----
    q = jnp.dot(xc.astype(cdt), wq_ref[...], preferred_element_type=f32) + b_q   # (Bt, D)
    kv = jnp.dot(act2, wkv_ref[...], preferred_element_type=f32) + b_kv          # (Bt*Lp, 2D)
    kv3 = kv.reshape(Bt, Lp, 2 * D)
    k3 = kv3[:, :, :D]                       # (Bt, Lp, D)
    v3 = kv3[:, :, D:]                       # (Bt, Lp, D)

    # scores s[b, l, h] = scale * (q[b] . k[b, l]) restricted to head h, + bias
    e = (q * scale)[:, None, :] * k3                                             # (Bt, Lp, D) f32
    s = jnp.dot(e.reshape(Bt * Lp, D).astype(cdt), red_ref[...],
                preferred_element_type=f32).reshape(Bt, Lp, nhead)
    s = s + mbias

    # softmax over keys (axis=1)
    m = jnp.max(s, axis=1, keepdims=True)
    p = jnp.exp(s - m)
    p = p * pl.reciprocal(jnp.sum(p, axis=1, keepdims=True), approx=True)

    # context: ctx[b, d] = sum_l p[b, l, head(d)] * v[b, l, d]
    pf = jnp.dot(p.reshape(Bt * Lp, nhead).astype(cdt), expm_ref[...],
                 preferred_element_type=f32).reshape(Bt, Lp, D)
    ctx = jnp.sum(pf * v3, axis=1)                                               # (Bt, D)

    attn_out = jnp.dot(ctx.astype(cdt), wo_ref[...], preferred_element_type=f32) + b_o

    # ---- residual + LayerNorm1 (post-norm, eps=1e-5), cls row only ----
    x1 = xc + attn_out
    mu1 = jnp.mean(x1, axis=-1, keepdims=True)
    var1 = jnp.mean((x1 - mu1) ** 2, axis=-1, keepdims=True)
    x1 = (x1 - mu1) * jax.lax.rsqrt(var1 + 1e-5) * g1 + be1

    # ---- feed-forward (ReLU), cls row only ----
    hid = jnp.dot(x1.astype(cdt), w1_ref[...], preferred_element_type=f32) + b_1
    hid = jnp.maximum(hid, 0.0)
    ff = jnp.dot(hid.astype(cdt), w2_ref[...], preferred_element_type=f32) + b_2

    # ---- residual + LayerNorm2 ----
    x2 = x1 + ff
    mu2 = jnp.mean(x2, axis=-1, keepdims=True)
    var2 = jnp.mean((x2 - mu2) ** 2, axis=-1, keepdims=True)
    x2 = (x2 - mu2) * jax.lax.rsqrt(var2 + 1e-5) * g2 + be2

    out_ref[...] = x2                                                            # (Bt, D) dense


# ----------------------------------------------------------------------------
# Parameter construction (deterministic, synthetic) — PyTorch-like layout:
# linear weights stored (in_features, out_features).
# ----------------------------------------------------------------------------
def make_params(key, feat_dim, num_labels, dim_feedforward=2048, max_len=10000):
    ks = jax.random.split(key, 8)
    D, FF, NL = feat_dim, dim_feedforward, num_labels

    def w(k, shape, scale=0.02):
        return (scale * jax.random.normal(k, shape)).astype(jnp.float32)

    # Sinusoidal positional-encoding table (PositionalEncoding buffer).
    position = jnp.arange(max_len, dtype=jnp.float32)[:, None]
    div_term = jnp.exp(jnp.arange(0, D, 2, dtype=jnp.float32) * (-math.log(10000.0) / D))
    pe = jnp.zeros((max_len, D), jnp.float32)
    pe = pe.at[:, 0::2].set(jnp.sin(position * div_term))
    pe = pe.at[:, 1::2].set(jnp.cos(position * div_term))

    return {
        "pe": pe,                                   # (max_len, D)
        "cls": w(ks[0], (1, 1, D), scale=1.0),      # nn.Parameter(randn(1,1,D))
        "w_qkv": w(ks[1], (D, 3 * D)),              # [Wq^T | Wk^T | Wv^T]
        "b_qkv": jnp.zeros((3 * D,), jnp.float32),
        "w_o": w(ks[2], (D, D)),
        "b_o": jnp.zeros((D,), jnp.float32),
        "ln1_g": jnp.ones((D,), jnp.float32),
        "ln1_b": jnp.zeros((D,), jnp.float32),
        "w_1": w(ks[3], (D, FF)),
        "b_1": jnp.zeros((FF,), jnp.float32),
        "w_2": w(ks[4], (FF, D)),
        "b_2": jnp.zeros((D,), jnp.float32),
        "ln2_g": jnp.ones((D,), jnp.float32),
        "ln2_b": jnp.zeros((D,), jnp.float32),
        "w_logits": w(ks[5], (D, NL)),
        "b_logits": jnp.zeros((1, NL), jnp.float32),
    }


def _pack_params(params, nhead, compute_dtype=jnp.bfloat16):
    """Pack weights / biases into kernel-friendly consolidated arrays."""
    D = params["w_o"].shape[0]
    FF = params["w_1"].shape[1]
    pmax = max(FF, 2 * D)

    w_qkv = params["w_qkv"]
    b_qkv = params["b_qkv"].reshape(-1)

    def row(vec):
        vec = vec.reshape(1, -1).astype(jnp.float32)
        return jnp.pad(vec, ((0, 0), (0, pmax - vec.shape[1])))

    pvec = jnp.concatenate([
        row(b_qkv[0:D]),                 # 0: b_q
        row(b_qkv[D:3 * D]),             # 1: b_kv = [b_k | b_v]
        row(params["b_o"]),              # 2
        row(params["ln1_g"]),            # 3
        row(params["ln1_b"]),            # 4
        row(params["b_1"]),              # 5
        row(params["b_2"]),              # 6
        row(params["ln2_g"]),            # 7
        row(params["ln2_b"]),            # 8
    ], axis=0)
    pvec = jnp.pad(pvec, ((0, 16 - pvec.shape[0]), (0, 0)))            # (16, pmax)

    # Head-segment selector matrices (0/1, exact in bf16); scale applied in f32
    # on q inside the kernel.
    hd = D // nhead
    h_of_d = jnp.arange(D, dtype=jnp.int32) // hd
    red = (h_of_d[:, None] == jnp.arange(nhead, dtype=jnp.int32)[None, :])
    red = red.astype(compute_dtype)                                    # (D, nhead)
    expm = jnp.transpose(red)                                          # (nhead, D)

    return {
        "w_q": w_qkv[:, 0:D].astype(compute_dtype),
        "w_kv": w_qkv[:, D:3 * D].astype(compute_dtype),               # [Wk | Wv]
        "w_o": params["w_o"].astype(compute_dtype),
        "w1": params["w_1"].astype(compute_dtype),
        # TODO(synk): W2 stays (FF, D) lane-sparse (fetched once); could be
        # stored transposed + dot_general if VMEM ever becomes tight.
        "w2": params["w_2"].astype(compute_dtype),
        "pvec": pvec,
        "red": red,
        "expm": expm,
    }


# ----------------------------------------------------------------------------
# Forward wrapper (XLA glue: pe gather, cls concat, mask bias, padding, logits)
# ----------------------------------------------------------------------------
def tx_scene_forward(params, feats, masks, *, nhead=8, block_b=None):
    x = feats[1]                                    # (B, S, D)
    mask = masks[1]                                 # (B, S), nonzero == padded
    bins = feats[4]                                 # (B, S) int32

    B, S, D = x.shape
    assert D % nhead == 0
    L = S + 1
    Lp = _round_up(L, 16)                           # bf16 sublane-tile aligned
    FF = params["w_1"].shape[1]
    NL = params["w_logits"].shape[1]
    pmax = max(FF, 2 * D)

    # Batch tile: big row blocks amortize the ~0.35us/step pipeline overhead,
    # but keep >= 2 grid steps when the batch allows (v7x: 2 TensorCores shard
    # the "parallel" batch axis); don't over-pad tiny batches.
    if block_b is None:
        block_b = 64
        while block_b > 8 and _round_up(B, block_b) // block_b < 2:
            block_b //= 2
    block_b = max(8, min(_round_up(block_b, 8), _round_up(B, 8)))
    Bp = _round_up(B, block_b)

    # Glue in XLA: positional add, cls concat, key-padding bias, padding.
    pos = params["pe"][bins]                                            # (B, S, D)
    cls_tok = jnp.broadcast_to(params["cls"].reshape(1, 1, D), (B, 1, D))
    xseq = jnp.concatenate([cls_tok, x + pos], axis=1)                  # (B, L, D) f32
    xseq = jnp.pad(xseq, ((0, Bp - B), (0, Lp - L), (0, 0)))

    keep = jnp.concatenate(
        [jnp.ones((B, 1), jnp.float32), (mask == 0).astype(jnp.float32)], axis=1)
    keep = jnp.pad(keep, ((0, Bp - B), (0, Lp - L)))                    # pads -> masked
    mbias = jnp.where(keep > 0, 0.0, -1e9)                              # (Bp, Lp)

    # Fold the key-padding bias into nhead extra lanes of the bf16 activation
    # block (free in VMEM: D lanes already pad to 128) -> no separate lane-1
    # mbias block / DMA stream.
    bias_cols = jnp.broadcast_to(mbias[:, :, None], (Bp, Lp, nhead))
    xf = jnp.concatenate([xseq, bias_cols], axis=-1).astype(jnp.bfloat16)  # (Bp, Lp, D+nhead)
    xc = xseq[:, 0, :]                                                  # (Bp, D) f32 cls rows

    packed = _pack_params(params, nhead)

    cls_emb = pl.pallas_call(
        tx_scene_kernel,
        out_shape=jax.ShapeDtypeStruct((Bp, D), jnp.float32),
        grid_spec=pltpu.PrefetchScalarGridSpec(
            num_scalar_prefetch=0,
            grid=(Bp // block_b,),
            in_specs=[
                pl.BlockSpec((block_b, Lp, D + nhead), lambda b: (b, 0, 0)),  # xf bf16
                pl.BlockSpec((block_b, D), lambda b: (b, 0)),                 # cls rows f32
                pl.BlockSpec((D, D), lambda b: (0, 0)),                       # Wq bf16
                pl.BlockSpec((D, 2 * D), lambda b: (0, 0)),                   # [Wk|Wv] bf16
                pl.BlockSpec((D, D), lambda b: (0, 0)),                       # Wo bf16
                pl.BlockSpec((D, FF), lambda b: (0, 0)),                      # W1 bf16
                pl.BlockSpec((FF, D), lambda b: (0, 0)),                      # W2 bf16
                pl.BlockSpec((16, pmax), lambda b: (0, 0)),                   # biases/LN f32
                pl.BlockSpec((D, nhead), lambda b: (0, 0)),                   # head-reduce
                pl.BlockSpec((nhead, D), lambda b: (0, 0)),                   # head-expand
            ],
            out_specs=pl.BlockSpec((block_b, D), lambda b: (b, 0)),
        ),
        compiler_params=pltpu.CompilerParams(
            dimension_semantics=("parallel",)),
    )(xf, xc, packed["w_q"], packed["w_kv"], packed["w_o"],
      packed["w1"], packed["w2"], packed["pvec"], packed["red"], packed["expm"])

    cls_emb = cls_emb[:B]                                               # (B, D)
    # Tiny logits matmul in XLA keeps the kernel output lane-dense (D wide,
    # not NL=7), avoiding masked partial stores.
    scene_out = cls_emb @ params["w_logits"] + params["b_logits"]       # (B, NL)
    blank_char_out = jnp.zeros((0, NL), jnp.float32)
    return [blank_char_out, scene_out]


# ----------------------------------------------------------------------------
# Pure-f32 JAX reference (mirrors the PyTorch module in eval mode).
# ----------------------------------------------------------------------------
def _layer_norm(x, g, b, eps=1e-5):
    mu = jnp.mean(x, axis=-1, keepdims=True)
    var = jnp.mean((x - mu) ** 2, axis=-1, keepdims=True)
    return (x - mu) * jax.lax.rsqrt(var + eps) * g + b


def tx_scene_reference(params, feats, masks, nhead=8):
    x = feats[1]
    mask = masks[1]
    bins = feats[4]
    B, S, D = x.shape
    L = S + 1
    pos = params["pe"][bins]
    cls_tok = jnp.broadcast_to(params["cls"].reshape(1, 1, D), (B, 1, D))
    h = jnp.concatenate([cls_tok, x + pos], axis=1)                     # (B, L, D)
    keep = jnp.concatenate(
        [jnp.ones((B, 1), jnp.float32), (mask == 0).astype(jnp.float32)], axis=1)
    bias = jnp.where(keep > 0, 0.0, -1e9)                               # (B, L)

    w = params["w_qkv"]
    bqkv = params["b_qkv"]
    q = h @ w[:, :D] + bqkv[:D]
    k = h @ w[:, D:2 * D] + bqkv[D:2 * D]
    v = h @ w[:, 2 * D:] + bqkv[2 * D:]
    hd = D // nhead
    qh = q.reshape(B, L, nhead, hd)
    kh = k.reshape(B, L, nhead, hd)
    vh = v.reshape(B, L, nhead, hd)
    s = jnp.einsum("bqhd,bkhd->bhqk", qh, kh) / math.sqrt(hd)
    s = s + bias[:, None, None, :]
    p = jax.nn.softmax(s, axis=-1)
    ctx = jnp.einsum("bhqk,bkhd->bqhd", p, vh).reshape(B, L, D)
    attn = ctx @ params["w_o"] + params["b_o"]
    x1 = _layer_norm(h + attn, params["ln1_g"], params["ln1_b"])
    ff = jnp.maximum(x1 @ params["w_1"] + params["b_1"], 0.0) @ params["w_2"] + params["b_2"]
    x2 = _layer_norm(x1 + ff, params["ln2_g"], params["ln2_b"])
    return x2[:, 0, :] @ params["w_logits"] + params["b_logits"]


# ----------------------------------------------------------------------------
if __name__ == "__main__":
    B, S, D = 2, 8, 32          # batch, max_seq_len, feat_dim  (nhead=8 -> hd=4)
    NUM_LABELS = 7

    key = jax.random.PRNGKey(0)
    kp, kx, kb = jax.random.split(key, 3)

    params = make_params(kp, feat_dim=D, num_labels=NUM_LABELS,
                         dim_feedforward=2048, max_len=10000)

    x = jax.random.normal(kx, (B, S, D), jnp.float32)          # feats[1]
    bins = jax.random.randint(kb, (B, S), 0, 100, jnp.int32)   # feats[4]
    # masks[1]: 0 = valid, 1 = padded; pad last 3 positions of batch 1.
    mask = jnp.zeros((B, S), jnp.float32)
    mask = mask.at[1, S - 3:].set(1.0)

    feats = [None, x, None, None, bins]
    masks = [None, mask]

    char_out, scene_out = tx_scene_forward(params, feats, masks)
    jax.block_until_ready(scene_out)

    assert char_out.shape == (0, NUM_LABELS)
    assert scene_out.shape == (B, NUM_LABELS)

    # bf16 MXU inputs + approx-reciprocal softmax -> loose tolerance vs f32 ref.
    ref = tx_scene_reference(params, feats, masks)
    err = float(jnp.max(jnp.abs(scene_out - ref)))
    assert err < 5e-2, f"max abs error vs f32 reference: {err}"
    print("KERNEL_OK")
</pallas_src>

<mosaic_0001>
module attributes {stable_mosaic.version = 11 : i64} {
  func.func @tx_scene_kernel(%arg0: i32, %arg1: memref<8x16x40xbf16, #tpu.memory_space<vmem>>, %arg2: memref<8x32xf32, #tpu.memory_space<vmem>>, %arg3: memref<32x32xbf16, #tpu.memory_space<vmem>>, %arg4: memref<32x64xbf16, #tpu.memory_space<vmem>>, %arg5: memref<32x32xbf16, #tpu.memory_space<vmem>>, %arg6: memref<32x2048xbf16, #tpu.memory_space<vmem>>, %arg7: memref<2048x32xbf16, #tpu.memory_space<vmem>>, %arg8: memref<16x2048xf32, #tpu.memory_space<vmem>>, %arg9: memref<32x8xbf16, #tpu.memory_space<vmem>>, %arg10: memref<8x32xbf16, #tpu.memory_space<vmem>>, %arg11: memref<8x32xf32, #tpu.memory_space<vmem>>) attributes {dimension_semantics = [#tpu.dimension_semantics<parallel>], iteration_bounds = array<i64: 1>, scalar_prefetch = 0 : i64, scratch_operands = 0 : i64, tpu.core_type = #tpu.core_type<tc>, window_params = [{transform_indices = @transform_0, window_bounds = array<i64: 8, 16, 40>}, {transform_indices = @transform_1, window_bounds = array<i64: 8, 32>}, {pipeline_mode = #tpu.pipeline_mode<synchronous>, transform_indices = @transform_2, window_bounds = array<i64: 32, 32>}, {pipeline_mode = #tpu.pipeline_mode<synchronous>, transform_indices = @transform_3, window_bounds = array<i64: 32, 64>}, {pipeline_mode = #tpu.pipeline_mode<synchronous>, transform_indices = @transform_4, window_bounds = array<i64: 32, 32>}, {pipeline_mode = #tpu.pipeline_mode<synchronous>, transform_indices = @transform_5, window_bounds = array<i64: 32, 2048>}, {pipeline_mode = #tpu.pipeline_mode<synchronous>, transform_indices = @transform_6, window_bounds = array<i64: 2048, 32>}, {pipeline_mode = #tpu.pipeline_mode<synchronous>, transform_indices = @transform_7, window_bounds = array<i64: 16, 2048>}, {pipeline_mode = #tpu.pipeline_mode<synchronous>, transform_indices = @transform_8, window_bounds = array<i64: 32, 8>}, {pipeline_mode = #tpu.pipeline_mode<synchronous>, transform_indices = @transform_9, window_bounds = array<i64: 8, 32>}, {transform_indices = @transform_10, window_bounds = array<i64: 8, 32>}]} {
    %c0 = arith.constant 0 : index
    %c0_0 = arith.constant 0 : index
    %c0_1 = arith.constant 0 : index
    %0 = vector.load %arg1[%c0, %c0_0, %c0_1] : memref<8x16x40xbf16, #tpu.memory_space<vmem>>, vector<8x16x40xbf16>
    %1 = vector.extract_strided_slice %0 {offsets = [0, 0, 0], sizes = [8, 16, 32], strides = [1, 1, 1]} : vector<8x16x40xbf16> to vector<8x16x32xbf16>
    %2 = vector.extract_strided_slice %0 {offsets = [0, 0, 32], sizes = [8, 16, 8], strides = [1, 1, 1]} : vector<8x16x40xbf16> to vector<8x16x8xbf16>
    %3 = arith.extf %2 : vector<8x16x8xbf16> to vector<8x16x8xf32>
    %4 = vector.shape_cast %1 : vector<8x16x32xbf16> to vector<128x32xbf16>
    %c0_2 = arith.constant 0 : index
    %c0_3 = arith.constant 0 : index
    %5 = vector.load %arg2[%c0_2, %c0_3] : memref<8x32xf32, #tpu.memory_space<vmem>>, vector<8x32xf32>
    %c0_4 = arith.constant 0 : index
    %c0_5 = arith.constant 0 : index
    %6 = vector.load %arg8[%c0_4, %c0_5] : memref<16x2048xf32, #tpu.memory_space<vmem>>, vector<1x32xf32>
    %c1 = arith.constant 1 : index
    %c0_6 = arith.constant 0 : index
    %7 = vector.load %arg8[%c1, %c0_6] : memref<16x2048xf32, #tpu.memory_space<vmem>>, vector<1x64xf32>
    %c2 = arith.constant 2 : index
    %c0_7 = arith.constant 0 : index
    %8 = vector.load %arg8[%c2, %c0_7] : memref<16x2048xf32, #tpu.memory_space<vmem>>, vector<1x32xf32>
    %c3 = arith.constant 3 : index
    %c0_8 = arith.constant 0 : index
    %9 = vector.load %arg8[%c3, %c0_8] : memref<16x2048xf32, #tpu.memory_space<vmem>>, vector<1x32xf32>
    %c4 = arith.constant 4 : index
    %c0_9 = arith.constant 0 : index
    %10 = vector.load %arg8[%c4, %c0_9] : memref<16x2048xf32, #tpu.memory_space<vmem>>, vector<1x32xf32>
    %c5 = arith.constant 5 : index
    %c0_10 = arith.constant 0 : index
    %11 = vector.load %arg8[%c5, %c0_10] : memref<16x2048xf32, #tpu.memory_space<vmem>>, vector<1x2048xf32>
    %c6 = arith.constant 6 : index
    %c0_11 = arith.constant 0 : index
    %12 = vector.load %arg8[%c6, %c0_11] : memref<16x2048xf32, #tpu.memory_space<vmem>>, vector<1x32xf32>
    %c7 = arith.constant 7 : index
    %c0_12 = arith.constant 0 : index
    %13 = vector.load %arg8[%c7, %c0_12] : memref<16x2048xf32, #tpu.memory_space<vmem>>, vector<1x32xf32>
    %c8 = arith.constant 8 : index
    %c0_13 = arith.constant 0 : index
    %14 = vector.load %arg8[%c8, %c0_13] : memref<16x2048xf32, #tpu.memory_space<vmem>>, vector<1x32xf32>
    %15 = arith.truncf %5 : vector<8x32xf32> to vector<8x32xbf16>
    %c0_14 = arith.constant 0 : index
    %c0_15 = arith.constant 0 : index
    %16 = vector.load %arg3[%c0_14, %c0_15] : memref<32x32xbf16, #tpu.memory_space<vmem>>, vector<32x32xbf16>
    %cst = arith.constant dense<0.000000e+00> : vector<8x32xf32>
    %17 = tpu.matmul %15, %16, %cst {dimension_numbers = #tpu.dot_dimension_numbers<[1], [0], [0], [1], [0, 0, 1, 1], [], []>} : vector<8x32xbf16>, vector<32x32xbf16>, vector<8x32xf32> -> vector<8x32xf32>
    %18 = vector.broadcast %6 : vector<1x32xf32> to vector<8x32xf32>
    %19 = arith.addf %17, %18 : vector<8x32xf32>
    %c0_16 = arith.constant 0 : index
    %c0_17 = arith.constant 0 : index
    %20 = vector.load %arg4[%c0_16, %c0_17] : memref<32x64xbf16, #tpu.memory_space<vmem>>, vector<32x64xbf16>
    %cst_18 = arith.constant dense<0.000000e+00> : vector<128x64xf32>
    %21 = tpu.matmul %4, %20, %cst_18 {dimension_numbers = #tpu.dot_dimension_numbers<[1], [0], [0], [1], [0, 0, 1, 1], [], []>} : vector<128x32xbf16>, vector<32x64xbf16>, vector<128x64xf32> -> vector<128x64xf32>
    %22 = vector.broadcast %7 : vector<1x64xf32> to vector<128x64xf32>
    %23 = arith.addf %21, %22 : vector<128x64xf32>
    %24 = vector.shape_cast %23 : vector<128x64xf32> to vector<8x16x64xf32>
    %25 = vector.extract_strided_slice %24 {offsets = [0, 0, 0], sizes = [8, 16, 32], strides = [1, 1, 1]} : vector<8x16x64xf32> to vector<8x16x32xf32>
    %26 = vector.extract_strided_slice %24 {offsets = [0, 0, 32], sizes = [8, 16, 32], strides = [1, 1, 1]} : vector<8x16x64xf32> to vector<8x16x32xf32>
    %cst_19 = arith.constant 5.000000e-01 : f32
    %27 = vector.broadcast %cst_19 : f32 to vector<8x32xf32>
    %28 = arith.mulf %19, %27 : vector<8x32xf32>
    %29 = vector.shape_cast %28 : vector<8x32xf32> to vector<8x1x32xf32>
    %30 = vector.broadcast %29 : vector<8x1x32xf32> to vector<8x16x32xf32>
    %31 = arith.mulf %30, %25 : vector<8x16x32xf32>
    %32 = vector.shape_cast %31 : vector<8x16x32xf32> to vector<128x32xf32>
    %33 = arith.truncf %32 : vector<128x32xf32> to vector<128x32xbf16>
    %c0_20 = arith.constant 0 : index
    %c0_21 = arith.constant 0 : index
    %34 = vector.load %arg9[%c0_20, %c0_21] : memref<32x8xbf16, #tpu.memory_space<vmem>>, vector<32x8xbf16>
    %cst_22 = arith.constant dense<0.000000e+00> : vector<128x8xf32>
    %35 = tpu.matmul %33, %34, %cst_22 {dimension_numbers = #tpu.dot_dimension_numbers<[1], [0], [0], [1], [0, 0, 1, 1], [], []>} : vector<128x32xbf16>, vector<32x8xbf16>, vector<128x8xf32> -> vector<128x8xf32>
    %36 = vector.shape_cast %35 : vector<128x8xf32> to vector<8x16x8xf32>
    %37 = arith.addf %36, %3 : vector<8x16x8xf32>
    %cst_23 = arith.constant dense<0xFF800000> : vector<8x8xf32>
    %38 = vector.multi_reduction <maximumf>, %37, %cst_23 [1] : vector<8x16x8xf32> to vector<8x8xf32>
    %39 = vector.shape_cast %38 : vector<8x8xf32> to vector<8x1x8xf32>
    %40 = vector.broadcast %39 : vector<8x1x8xf32> to vector<8x16x8xf32>
    %41 = arith.subf %37, %40 : vector<8x16x8xf32>
    %42 = math.exp %41 : vector<8x16x8xf32>
    %cst_24 = arith.constant dense<0.000000e+00> : vector<8x8xf32>
    %43 = vector.multi_reduction <add>, %42, %cst_24 [1] : vector<8x16x8xf32> to vector<8x8xf32>
    %44 = vector.shape_cast %43 : vector<8x8xf32> to vector<8x1x8xf32>
    %45 = tpu.reciprocal %44 {approx = true} : vector<8x1x8xf32> -> vector<8x1x8xf32>
    %46 = vector.broadcast %45 : vector<8x1x8xf32> to vector<8x16x8xf32>
    %47 = arith.mulf %42, %46 : vector<8x16x8xf32>
    %48 = vector.shape_cast %47 : vector<8x16x8xf32> to vector<128x8xf32>
    %49 = arith.truncf %48 : vector<128x8xf32> to vector<128x8xbf16>
    %c0_25 = arith.constant 0 : index
    %c0_26 = arith.constant 0 : index
    %50 = vector.load %arg10[%c0_25, %c0_26] : memref<8x32xbf16, #tpu.memory_space<vmem>>, vector<8x32xbf16>
    %cst_27 = arith.constant dense<0.000000e+00> : vector<128x32xf32>
    %51 = tpu.matmul %49, %50, %cst_27 {dimension_numbers = #tpu.dot_dimension_numbers<[1], [0], [0], [1], [0, 0, 1, 1], [], []>} : vector<128x8xbf16>, vector<8x32xbf16>, vector<128x32xf32> -> vector<128x32xf32>
    %52 = vector.shape_cast %51 : vector<128x32xf32> to vector<8x16x32xf32>
    %53 = arith.mulf %52, %26 : vector<8x16x32xf32>
    %cst_28 = arith.constant dense<0.000000e+00> : vector<8x32xf32>
    %54 = vector.multi_reduction <add>, %53, %cst_28 [1] : vector<8x16x32xf32> to vector<8x32xf32>
    %55 = arith.truncf %54 : vector<8x32xf32> to vector<8x32xbf16>
    %c0_29 = arith.constant 0 : index
    %c0_30 = arith.constant 0 : index
    %56 = vector.load %arg5[%c0_29, %c0_30] : memref<32x32xbf16, #tpu.memory_space<vmem>>, vector<32x32xbf16>
    %cst_31 = arith.constant dense<0.000000e+00> : vector<8x32xf32>
    %57 = tpu.matmul %55, %56, %cst_31 {dimension_numbers = #tpu.dot_dimension_numbers<[1], [0], [0], [1], [0, 0, 1, 1], [], []>} : vector<8x32xbf16>, vector<32x32xbf16>, vector<8x32xf32> -> vector<8x32xf32>
    %58 = vector.broadcast %8 : vector<1x32xf32> to vector<8x32xf32>
    %59 = arith.addf %57, %58 : vector<8x32xf32>
    %60 = arith.addf %5, %59 : vector<8x32xf32>
    %cst_32 = arith.constant dense<0.000000e+00> : vector<8xf32>
    %61 = vector.multi_reduction <add>, %60, %cst_32 [1] : vector<8x32xf32> to vector<8xf32>
    %62 = vector.shape_cast %61 : vector<8xf32> to vector<8x1xf32>
    %cst_33 = arith.constant 3.200000e+01 : f32
    %63 = vector.broadcast %cst_33 : f32 to vector<8x1xf32>
    %64 = arith.divf %62, %63 : vector<8x1xf32>
    %65 = vector.broadcast %64 : vector<8x1xf32> to vector<8x32xf32>
    %66 = arith.subf %60, %65 : vector<8x32xf32>
    %67 = arith.mulf %66, %66 : vector<8x32xf32>
    %cst_34 = arith.constant dense<0.000000e+00> : vector<8xf32>
    %68 = vector.multi_reduction <add>, %67, %cst_34 [1] : vector<8x32xf32> to vector<8xf32>
    %69 = vector.shape_cast %68 : vector<8xf32> to vector<8x1xf32>
    %cst_35 = arith.constant 3.200000e+01 : f32
    %70 = vector.broadcast %cst_35 : f32 to vector<8x1xf32>
    %71 = arith.divf %69, %70 : vector<8x1xf32>
    %72 = vector.broadcast %64 : vector<8x1xf32> to vector<8x32xf32>
    %73 = arith.subf %60, %72 : vector<8x32xf32>
    %cst_36 = arith.constant 9.99999974E-6 : f32
    %74 = vector.broadcast %cst_36 : f32 to vector<8x1xf32>
    %75 = arith.addf %71, %74 : vector<8x1xf32>
    %76 = math.rsqrt %75 : vector<8x1xf32>
    %77 = vector.broadcast %76 : vector<8x1xf32> to vector<8x32xf32>
    %78 = arith.mulf %73, %77 : vector<8x32xf32>
    %79 = vector.broadcast %9 : vector<1x32xf32> to vector<8x32xf32>
    %80 = arith.mulf %78, %79 : vector<8x32xf32>
    %81 = vector.broadcast %10 : vector<1x32xf32> to vector<8x32xf32>
    %82 = arith.addf %80, %81 : vector<8x32xf32>
    %83 = arith.truncf %82 : vector<8x32xf32> to vector<8x32xbf16>
    %c0_37 = arith.constant 0 : index
    %c0_38 = arith.constant 0 : index
    %84 = vector.load %arg6[%c0_37, %c0_38] : memref<32x2048xbf16, #tpu.memory_space<vmem>>, vector<32x2048xbf16>
    %cst_39 = arith.constant dense<0.000000e+00> : vector<8x2048xf32>
    %85 = tpu.matmul %83, %84, %cst_39 {dimension_numbers = #tpu.dot_dimension_numbers<[1], [0], [0], [1], [0, 0, 1, 1], [], []>} : vector<8x32xbf16>, vector<32x2048xbf16>, vector<8x2048xf32> -> vector<8x2048xf32>
    %86 = vector.broadcast %11 : vector<1x2048xf32> to vector<8x2048xf32>
    %87 = arith.addf %85, %86 : vector<8x2048xf32>
    %cst_40 = arith.constant 0.000000e+00 : f32
    %88 = vector.broadcast %cst_40 : f32 to vector<8x2048xf32>
    %89 = arith.maximumf %87, %88 : vector<8x2048xf32>
    %90 = arith.truncf %89 : vector<8x2048xf32> to vector<8x2048xbf16>
    %c0_41 = arith.constant 0 : index
    %c0_42 = arith.constant 0 : index
    %91 = vector.load %arg7[%c0_41, %c0_42] : memref<2048x32xbf16, #tpu.memory_space<vmem>>, vector<2048x32xbf16>
    %cst_43 = arith.constant dense<0.000000e+00> : vector<8x32xf32>
    %92 = tpu.matmul %90, %91, %cst_43 {dimension_numbers = #tpu.dot_dimension_numbers<[1], [0], [0], [1], [0, 0, 1, 1], [], []>} : vector<8x2048xbf16>, vector<2048x32xbf16>, vector<8x32xf32> -> vector<8x32xf32>
    %93 = vector.broadcast %12 : vector<1x32xf32> to vector<8x32xf32>
    %94 = arith.addf %92, %93 : vector<8x32xf32>
    %95 = arith.addf %82, %94 : vector<8x32xf32>
    %cst_44 = arith.constant dense<0.000000e+00> : vector<8xf32>
    %96 = vector.multi_reduction <add>, %95, %cst_44 [1] : vector<8x32xf32> to vector<8xf32>
    %97 = vector.shape_cast %96 : vector<8xf32> to vector<8x1xf32>
    %cst_45 = arith.constant 3.200000e+01 : f32
    %98 = vector.broadcast %cst_45 : f32 to vector<8x1xf32>
    %99 = arith.divf %97, %98 : vector<8x1xf32>
    %100 = vector.broadcast %99 : vector<8x1xf32> to vector<8x32xf32>
    %101 = arith.subf %95, %100 : vector<8x32xf32>
    %102 = arith.mulf %101, %101 : vector<8x32xf32>
    %cst_46 = arith.constant dense<0.000000e+00> : vector<8xf32>
    %103 = vector.multi_reduction <add>, %102, %cst_46 [1] : vector<8x32xf32> to vector<8xf32>
    %104 = vector.shape_cast %103 : vector<8xf32> to vector<8x1xf32>
    %cst_47 = arith.constant 3.200000e+01 : f32
    %105 = vector.broadcast %cst_47 : f32 to vector<8x1xf32>
    %106 = arith.divf %104, %105 : vector<8x1xf32>
    %107 = vector.broadcast %99 : vector<8x1xf32> to vector<8x32xf32>
    %108 = arith.subf %95, %107 : vector<8x32xf32>
    %cst_48 = arith.constant 9.99999974E-6 : f32
    %109 = vector.broadcast %cst_48 : f32 to vector<8x1xf32>
    %110 = arith.addf %106, %109 : vector<8x1xf32>
    %111 = math.rsqrt %110 : vector<8x1xf32>
    %112 = vector.broadcast %111 : vector<8x1xf32> to vector<8x32xf32>
    %113 = arith.mulf %108, %112 : vector<8x32xf32>
    %114 = vector.broadcast %13 : vector<1x32xf32> to vector<8x32xf32>
    %115 = arith.mulf %113, %114 : vector<8x32xf32>
    %116 = vector.broadcast %14 : vector<1x32xf32> to vector<8x32xf32>
    %117 = arith.addf %115, %116 : vector<8x32xf32>
    %c0_49 = arith.constant 0 : index
    %c0_50 = arith.constant 0 : index
    %118 = vector.load %arg11[%c0_49, %c0_50] : memref<8x32xf32, #tpu.memory_space<vmem>>, vector<8x32xf32>
    tpu.vector_store %arg11[%c0_49, %c0_50], %117 {strides = array<i32>} : memref<8x32xf32, #tpu.memory_space<vmem>>, vector<8x32xf32>,
    return
  }
  func.func @transform_0(%arg0: i32) -> (i32, i32, i32) {
    %c0_i32 = arith.constant 0 : i32
    %c0_i32_0 = arith.constant 0 : i32
    %c0_i32_1 = arith.constant 0 : i32
    return %arg0, %c0_i32, %c0_i32_0 : i32, i32, i32
  }
  func.func @transform_1(%arg0: i32) -> (i32, i32) {
    %c0_i32 = arith.constant 0 : i32
    %c0_i32_0 = arith.constant 0 : i32
    return %arg0, %c0_i32 : i32, i32
  }
  func.func @transform_2(%arg0: i32) -> (i32, i32) {
    %c0_i32 = arith.constant 0 : i32
    %c0_i32_0 = arith.constant 0 : i32
    %c0_i32_1 = arith.constant 0 : i32
    return %c0_i32, %c0_i32_0 : i32, i32
  }
  func.func @transform_3(%arg0: i32) -> (i32, i32) {
    %c0_i32 = arith.constant 0 : i32
    %c0_i32_0 = arith.constant 0 : i32
    %c0_i32_1 = arith.constant 0 : i32
    return %c0_i32, %c0_i32_0 : i32, i32
  }
  func.func @transform_4(%arg0: i32) -> (i32, i32) {
    %c0_i32 = arith.constant 0 : i32
    %c0_i32_0 = arith.constant 0 : i32
    %c0_i32_1 = arith.constant 0 : i32
    return %c0_i32, %c0_i32_0 : i32, i32
  }
  func.func @transform_5(%arg0: i32) -> (i32, i32) {
    %c0_i32 = arith.constant 0 : i32
    %c0_i32_0 = arith.constant 0 : i32
    %c0_i32_1 = arith.constant 0 : i32
    return %c0_i32, %c0_i32_0 : i32, i32
  }
  func.func @transform_6(%arg0: i32) -> (i32, i32) {
    %c0_i32 = arith.constant 0 : i32
    %c0_i32_0 = arith.constant 0 : i32
    %c0_i32_1 = arith.constant 0 : i32
    return %c0_i32, %c0_i32_0 : i32, i32
  }
  func.func @transform_7(%arg0: i32) -> (i32, i32) {
    %c0_i32 = arith.constant 0 : i32
    %c0_i32_0 = arith.constant 0 : i32
    %c0_i32_1 = arith.constant 0 : i32
    return %c0_i32, %c0_i32_0 : i32, i32
  }
  func.func @transform_8(%arg0: i32) -> (i32, i32) {
    %c0_i32 = arith.constant 0 : i32
    %c0_i32_0 = arith.constant 0 : i32
    %c0_i32_1 = arith.constant 0 : i32
    return %c0_i32, %c0_i32_0 : i32, i32
  }
  func.func @transform_9(%arg0: i32) -> (i32, i32) {
    %c0_i32 = arith.constant 0 : i32
    %c0_i32_0 = arith.constant 0 : i32
    %c0_i32_1 = arith.constant 0 : i32
    return %c0_i32, %c0_i32_0 : i32, i32
  }
  func.func @transform_10(%arg0: i32) -> (i32, i32) {
    %c0_i32 = arith.constant 0 : i32
    %c0_i32_0 = arith.constant 0 : i32
    return %arg0, %c0_i32 : i32, i32
  }
}

</mosaic_0001>

<bundles_post_ra>
// kernel: tpu_custom_call.1
= control target key start
LH: loop header
LB: loop body
LE: loop exit
PB: predicated region body
PF: predicated region fallthrough
CT: control target
= control target key end

     0   :  { %v4076_v1 = vmov 0.0   ;;  %vm4077_vm0 = vmmov 0   ;;  %vm103_vm1 = vcmask 261120   ;;  %s4078_s11 = smov 96   ;;  %s5079_s0 = inlined_call_operand.vmem [shape: bf16[8,16,40], index: 0, kind: input, shape index: {}]   ;;  %s5080_s1 = inlined_call_operand.vmem [shape: f32[8,32], index: 1, kind: input, shape index: {}]   ;;  %s5081_s2 = inlined_call_operand.vmem [shape: bf16[32,32], index: 2, kind: input, shape index: {}]   ;;  %s5082_s3 = inlined_call_operand.vmem [shape: bf16[32,64], index: 3, kind: input, shape index: {}]   ;;  %s5083_s4 = inlined_call_operand.vmem [shape: bf16[32,32], index: 4, kind: input, shape index: {}]   ;;  %s5084_s5 = inlined_call_operand.vmem [shape: bf16[32,2048], index: 5, kind: input, shape index: {}]   ;;  %s5085_s6 = inlined_call_operand.vmem [shape: bf16[2048,32], index: 6, kind: input, shape index: {}]   ;;  %s5086_s7 = inlined_call_operand.vmem [shape: f32[16,2048], index: 7, kind: input, shape index: {}]   ;;  %s5087_s8 = inlined_call_operand.vmem [shape: bf16[32,8], index: 8, kind: input, shape index: {}]   ;;  %s5088_s9 = inlined_call_operand.vmem [shape: bf16[8,32], index: 9, kind: input, shape index: {}]   ;;  %s5089_s10 = inlined_call_operand.hbm [shape: f32[8,32], index: 10, kind: output, shape index: {}]  }
   0x1   :  { %v3833_v0 = vld [vmem:[%s5081_s2 + $0x8] sm:$0xff]   ;;  %3712 = vmatprep.subr.bf16.mxu0 %v4076_v1  ;;  %v3835_v3 = vld [vmem:[%s5081_s2] sm:$0xff]   ;;  %3716 = vmatprep.mubr.msk.bf16.mxu0 %vm4077_vm0, %v4076_v1  ;;  %v41_v9 = vld [vmem:[%s5079_s0 + $0x10] sm:$0xff]  }
   0x2   :  { %v3834_v2 = vld [vmem:[%s5082_s3 + $0x8] sm:$0xff]   ;;  %3713 = vmatpush3.bf16.msra.mxu0 %v3833_v0  ;;  %v3836_v4 = vld [vmem:[%s5082_s3] sm:$0xff]   ;;  %v43_v11 = vld [vmem:[%s5079_s0 + $0x18] sm:$0xff]   ;;  %v57_v14 = vunpack.c.l.bf16 %v41_v9  ;;  %v58_v16 = vunpack.c.h.bf16 %v41_v9 }
   0x3   :  { %3720 = vmatprep.subr.bf16.mxu1 %v3834_v2  ;;  %3714 = vmatprep.subr.bf16.mxu0 %v4076_v1  ;;  %v69_v5 = vld [vmem:[%s5080_s1] sm:$0xff]  ;;  %v39_v7 = vld [vmem:[%s5079_s0 + $0x8] sm:$0xff]   ;;  %v59_v19 = vunpack.c.l.bf16 %v43_v11  ;;  %v60_v20 = vunpack.c.h.bf16 %v43_v11  ;;  %v49_v28 = vld [vmem:[%s5079_s0 + $0x30] sm:$0xff]  }
   0x4   :  { %3721 = vmatpush3.bf16.msra.mxu1 %v3834_v2  ;;  %v37_v6 = vld [vmem:[%s5079_s0] sm:$0xff]   ;;  %v86_v8 = vpack.c.bf16 %v69_v5, %v69_v5  ;;  %v55_v17 = vunpack.c.l.bf16 %v39_v7  ;;  %v56_v18 = vunpack.c.h.bf16 %v39_v7  ;;  %v3803_v21 = vpack.i.bf16 %v58_v16, %v57_v14  ;;  %v47_v27 = vld [vmem:[%s5079_s0 + $0x28] sm:$0xff]   ;;  %v51_v29 = vld [vmem:[%s5079_s0 + $0x38] sm:$0xff]  }
   0x5   :  { %3722 = vmatprep.subr.bf16.mxu1 %v3836_v4  ;;  %v53_v10 = vunpack.c.l.bf16 %v37_v6  ;;  %v54_v12 = vunpack.c.h.bf16 %v37_v6  ;;  %3724 = vmatprep.mubr.msk.bf16.mxu1 %vm103_vm1, %v37_v6  ;;  %v45_v13 = vld [vmem:[%s5079_s0 + $0x20] sm:$0xff]   ;;  %v3808_v25 = vpack.i.bf16 %v60_v20, %v59_v19  ;;  %v63_v30 = vunpack.c.l.bf16 %v47_v27  ;;  %v3845_v39 = vld [vmem:[%s5087_s8 + $0x8] sm:$0xff]  }
   0x6   :  { %3715 = vmatpush3.bf16.msra.mxu0 %v3835_v3  ;;  %v3798_v22 = vpack.i.bf16 %v56_v18, %v55_v17  ;;  %v61_v23 = vunpack.c.l.bf16 %v45_v13  ;;  %v62_v24 = vunpack.c.h.bf16 %v45_v13  ;;  %3804 = vrot.lane.b32.xlu1 %v3803_v21, %s4078_s11  ;;  %v64_v31 = vunpack.c.h.bf16 %v47_v27  ;;  %v3846_v40 = vld [vmem:[%s5087_s8] sm:$0xff]  }
   0x7   :  { %v3793_v15 = vpack.i.bf16 %v54_v12, %v53_v10  ;;  %v65_v32 = vunpack.c.l.bf16 %v49_v28  ;;  %v66_v33 = vunpack.c.h.bf16 %v49_v28  ;;  %v67_v36 = vunpack.c.l.bf16 %v51_v29  ;;  %3740 = vmatprep.subr.bf16.mxu0 %v3845_v39 }
   0x8   :  { %3723 = vmatpush3.bf16.msra.mxu1 %v3836_v4  ;;  %v3813_v26 = vpack.i.bf16 %v62_v24, %v61_v23  ;;  %v3818_v34 = vpack.i.bf16 %v64_v31, %v63_v30  ;;  %v68_v37 = vunpack.c.h.bf16 %v51_v29 }
   0x9   :  { %3717 = vmatmul.mubr.msk.bf16.vlgmr.msra.gmra.mxu0 %vm103_vm1, %v86_v8  ;;  %3794 = vrot.lane.b32.xlu0 %v3793_v15, %s4078_s11  ;;  %v3823_v35 = vpack.i.bf16 %v66_v33, %v65_v32 }
   0xa   :  { %3809 = vrot.lane.b32.xlu1 %v3808_v25, %s4078_s11  ;;  %v3828_v38 = vpack.i.bf16 %v68_v37, %v67_v36  ;;  %3741 = vmatpush3.bf16.msra.mxu0 %v3845_v39 }
   0xb   :  { %3725 = vmatmul.mubr.msk.bf16.vlgmr.msra.gmra.mxu1 %vm103_vm1, %v39_v7  ;;  %3742 = vmatprep.subr.bf16.mxu0 %v3846_v40 }
   0xc   :  { %3728 = vmatprep.mubr.msk.bf16.mxu1 %vm103_vm1, %v41_v9 }
   0xd   :  { %3799 = vrot.lane.b32.xlu0 %v3798_v22, %s4078_s11 }
   0xe   :  { %3819 = vrot.lane.b32.xlu1 %v3818_v34, %s4078_s11  ;;  %3743 = vmatpush3.bf16.msra.mxu0 %v3846_v40 }
   0xf   :  { %3778 = vmatprep.subr.bf16.mxu0 %v4076_v1 }
  0x11   :  { %3814 = vrot.lane.b32.xlu0 %v3813_v26, %s4078_s11 }
  0x12   :  { %3829 = vrot.lane.b32.xlu1 %v3828_v38, %s4078_s11 }
  0x13   :  { %3729 = vmatmul.mubr.msk.bf16.gmra.mxu1 %vm103_vm1, %v43_v11 }
  0x14   :  { %3732 = vmatprep.mubr.msk.bf16.mxu1 %vm103_vm1, %v45_v13 }
  0x15   :  { %3824 = vrot.lane.b32.xlu0 %v3823_v35, %s4078_s11 }
  0x1b   :  { %3733 = vmatmul.mubr.msk.bf16.gmra.mxu1 %vm103_vm1, %v47_v27 }
  0x1c   :  { %3736 = vmatprep.mubr.msk.bf16.mxu1 %vm103_vm1, %v49_v28 }
  0x23   :  { %3737 = vmatmul.mubr.msk.bf16.gmra.mxu1 %vm103_vm1, %v51_v29 }
  0x24   :  { %15 = vsyncpa [#allocation3], 0  ;;  %v4079_v41 = vmov 1966171168   ;;  %v330_v43 = vlaneseq  ;;  %v70_v46 = vld [vmem:[%s5086_s7] ss:$0 sm:$0xff] }
  0x25   :  { %v328_v42 = vunpack.c.l.s4 %v4079_v41  ;;  %v4212_v48 = vld [vmem:[%s5086_s7 + $0x1] ss:$0 sm:$0xff]  ;;  %vm906_vm2 = vcmask 1043456   ;;  %vm656_vm3 = vcmask 64512   ;;  %vm1187_vm4 = vcmask 1041409   ;;  %s4081_s13 = smov [#allocation2]  }
  0x26   :  { %v4204_v45 = vshrl.u32 %v330_v43, 7  ;;  %vm1189_vm5 = vcmask 1042434   ;;  %vm1191_vm6 = vcmask 1043459   ;;  %vm1193_vm7 = vcmask 1044484  }
  0x27   :  { %v329_v44 = vunpack.c.0.s8 %v328_v42  ;;  %vm1195_vm8 = vcmask 1045509   ;;  %vm1197_vm9 = vcmask 1046534   ;;  %vm1199_vm10 = vcmask 1047559  }
  0x28   :  { %v4217_v58 = vsub.s32 0, %v4204_v45 }
  0x29   :  { %v332_v50 = vsub.s32 %v329_v44, %v4204_v45 }
  0xc9   :  { %v141_v47 = vpop.f32.mrf.mxu0 }
  0xca   :  { %v142_v49 = vadd.f32 %v141_v47, %v70_v46 }
  0xcb   :  { %v3726_v51 = vpop.f32.mrf.mxu1  ;;  %v3718_v52 = vpop.f32.mrf.mxu0 }
  0xcc   :  { %v324_v53 = vmul.f32 0.5, %v142_v49  ;;  %v270_v54 = vadd.f32 %v3726_v51, %v4212_v48 }
  0xcd   :  { %v261_v55 = vpop.f32.mrf.mxu1  ;;  %v144_v56 = vpop.f32.mrf.mxu0 }
  0xce   :  { %v333_v57 = vrot.slane %v324_v53, %v332_v50  ;;  %1027 = vrot.lane.b32.xlu0 %v270_v54, %s4078_s11  ;;  %v262_v0 = vadd.f32 %v261_v55, %v4212_v48  ;;  %v326_v3 = vcombine.high %v324_v53, %v324_v53 }
  0xcf   :  { %v3727_v59 = vpop.f32.mrf.mxu1  ;;  %v3719_v60 = vpop.f32.mrf.mxu0 }
  0xd0   :  { %v341_v61 = vcombine.high %v333_v57, %v333_v57  ;;  %v349_v62 = vrot.slane %v333_v57, %v332_v50  ;;  %v273_v63 = vadd.f32 %v3727_v59, %v4212_v48  ;;  %v340_v15 = vrot.slane %v326_v3, %v332_v50 }
  0xd1   :  { %v264_v2 = vpop.f32.mrf.mxu1 }
  0xd2   :  { %v363_v4 = vrot.slane %v341_v61, %v332_v50  ;;  %v378_v5 = vrot.slane %v349_v62, %v4217_v58  ;;  %v265_v6 = vadd.f32 %v264_v2, %v4212_v48  ;;  %1029 = vrot.lane.b32.xlu1 %v273_v63, %s4078_s11  ;;  %1023 = vrot.lane.b32.xlu0 %v262_v0, %s4078_s11 }
  0xd3   :  { %v3730_v7 = vpop.f32.mrf.mxu1  ;;  %v371_v8 = vcombine.high %v349_v62, %v349_v62  ;;  %v342_v26 = vcombine.high %v340_v15, %v340_v15  ;;  %v356_v37 = vrot.slane %v340_v15, %v332_v50 }
  0xd4   :  { %v382_v9 = vrot.slane %v363_v4, %v4217_v58  ;;  %v415_v10 = vmul.f32 %v378_v5, %v262_v0  ;;  %v416_v11 = vmul.f32 %v378_v5, %v265_v6  ;;  %v286_v12 = vadd.f32 %v3730_v7, %v4212_v48 }
  0xd5   :  { %v373_v13 = vcombine.high %v363_v4, %v363_v4  ;;  %v277_v14 = vpop.f32.mrf.mxu1  ;;  %v386_v20 = vrot.slane %v371_v8, %v4217_v58  ;;  %v370_v36 = vrot.slane %v342_v26, %v332_v50  ;;  %v394_v44 = vrot.slane %v356_v37, %v4217_v58 }
  0xd6   :  { %v417_v16 = vmul.f32 %v382_v9, %v270_v54  ;;  %v418_v17 = vmul.f32 %v382_v9, %v273_v63  ;;  %v431_v18 = vpack.c.bf16 %v416_v11, %v415_v10  ;;  %1025 = vrot.lane.b32.xlu1 %v265_v6, %s4078_s11  ;;  %v278_v19 = vadd.f32 %v277_v14, %v4212_v48  ;;  %v3795_v11 = vpop.permute.xlu0 %3794 }
  0xd7   :  { %1035 = vrot.lane.b32.xlu0 %v286_v12, %s4078_s11  ;;  %v3731_v21 = vpop.f32.mrf.mxu1  ;;  %v390_v23 = vrot.slane %v373_v13, %v4217_v58  ;;  %v398_v43 = vrot.slane %v370_v36, %v4217_v58  ;;  %v374_v52 = vcombine.high %v370_v36, %v370_v36  ;;  %v372_v57 = vcombine.high %v356_v37, %v356_v37  ;;  %v3805_v13 = vpop.permute.xlu1 %3804 }
  0xd8   :  { %v432_v22 = vpack.c.bf16 %v418_v17, %v417_v16  ;;  %v289_v24 = vadd.f32 %v3731_v21, %v4212_v48  ;;  %3744 = vmatprep.mubr.msk.bf16.mxu0 %vm103_vm1, %v431_v18  ;;  %v419_v28 = vmul.f32 %v386_v20, %v278_v19 }
  0xd9   :  { %v280_v25 = vpop.f32.mrf.mxu1  ;;  %v421_v30 = vmul.f32 %v390_v23, %v286_v12  ;;  %v406_v0 = vrot.slane %v374_v52, %v4217_v58  ;;  %v402_v2 = vrot.slane %v372_v57, %v4217_v58 }
  0xda   :  { %v281_v27 = vadd.f32 %v280_v25, %v4212_v48  ;;  %1037 = vrot.lane.b32.xlu1 %v289_v24, %s4078_s11  ;;  %3745 = vmatmul.mubr.msk.bf16.vlgmr.msra.gmra.mxu0 %vm103_vm1, %v432_v22  ;;  %v422_v31 = vmul.f32 %v390_v23, %v289_v24  ;;  %v3800_v12 = vpop.permute.xlu0 %3799 }
  0xdb   :  { %1031 = vrot.lane.b32.xlu0 %v278_v19, %s4078_s11  ;;  %v3734_v29 = vpop.f32.mrf.mxu1 }
  0xdc   :  { %v420_v32 = vmul.f32 %v386_v20, %v281_v27  ;;  %v302_v33 = vadd.f32 %v3734_v29, %v4212_v48  ;;  %v434_v39 = vpack.c.bf16 %v422_v31, %v421_v30  ;;  %v3810_v20 = vpop.permute.xlu1 %3809 }
  0xdd   :  { %v293_v34 = vpop.f32.mrf.mxu1 }
  0xde   :  { %v433_v35 = vpack.c.bf16 %v420_v32, %v419_v28  ;;  %1033 = vrot.lane.b32.xlu1 %v281_v27, %s4078_s11  ;;  %v294_v40 = vadd.f32 %v293_v34, %v4212_v48  ;;  %v425_v54 = vmul.f32 %v398_v43, %v302_v33  ;;  %v3815_v32 = vpop.permute.xlu0 %3814 }
  0xdf   :  { %1043 = vrot.lane.b32.xlu0 %v302_v33, %s4078_s11  ;;  %v3735_v38 = vpop.f32.mrf.mxu1 }
  0xe0   :  { %v305_v41 = vadd.f32 %v3735_v38, %v4212_v48  ;;  %3748 = vmatprep.mubr.msk.bf16.mxu0 %vm103_vm1, %v433_v35  ;;  %v423_v49 = vmul.f32 %v394_v44, %v294_v40  ;;  %v3820_v34 = vpop.permute.xlu1 %3819 }
  0xe1   :  { %v296_v42 = vpop.f32.mrf.mxu1 }
  0xe2   :  { %v297_v46 = vadd.f32 %v296_v42, %v4212_v48  ;;  %1045 = vrot.lane.b32.xlu1 %v305_v41, %s4078_s11  ;;  %3749 = vmatmul.mubr.msk.bf16.gmra.mxu0 %vm103_vm1, %v434_v39  ;;  %v426_v50 = vmul.f32 %v398_v43, %v305_v41 }
  0xe3   :  { %1039 = vrot.lane.b32.xlu0 %v294_v40, %s4078_s11  ;;  %v3738_v47 = vpop.f32.mrf.mxu1 }
  0xe4   :  { %v424_v51 = vmul.f32 %v394_v44, %v297_v46  ;;  %v436_v60 = vpack.c.bf16 %v426_v50, %v425_v54  ;;  %v318_v63 = vadd.f32 %v3738_v47, %v4212_v48 }
  0xe5   :  { %v309_v53 = vpop.f32.mrf.mxu1 }
  0xe6   :  { %v435_v55 = vpack.c.bf16 %v424_v51, %v423_v49  ;;  %v310_v56 = vadd.f32 %v309_v53, %v4212_v48  ;;  %1041 = vrot.lane.b32.xlu1 %v297_v46, %s4078_s11  ;;  %v429_v7 = vmul.f32 %v406_v0, %v318_v63 }
  0xe7   :  { %v3739_v59 = vpop.f32.mrf.mxu1 }
  0xe8   :  { %v321_v61 = vadd.f32 %v3739_v59, %v4212_v48  ;;  %3752 = vmatprep.mubr.msk.bf16.mxu0 %vm103_vm1, %v435_v55  ;;  %1047 = vrot.lane.b32.xlu0 %v310_v56, %s4078_s11  ;;  %v427_v4 = vmul.f32 %v402_v2, %v310_v56  ;;  %v3825_v55 = vpop.permute.xlu0 %3824 }
  0xe9   :  { %v312_v62 = vpop.f32.mrf.mxu1 }
  0xea   :  { %v313_v3 = vadd.f32 %v312_v62, %v4212_v48  ;;  %3753 = vmatmul.mubr.msk.bf16.gmra.mxu0 %vm103_vm1, %v436_v60  ;;  %v430_v5 = vmul.f32 %v406_v0, %v321_v61  ;;  %v881_v48 = vld [vmem:[%s5088_s9] sm:$0xf] }
  0xeb   :  { %3786 = vmatprep.subr.msk.bf16.mxu1 %vm906_vm2, %v881_v48  ;;  %v908_v10 = vsel %vm906_vm2, %v881_v48, 0 }
  0xec   :  { %v428_v6 = vmul.f32 %v402_v2, %v313_v3  ;;  %1049 = vrot.lane.b32.xlu1 %v313_v3, %s4078_s11  ;;  %1051 = vrot.lane.b32.xlu0 %v318_v63, %s4078_s11  ;;  %v438_v9 = vpack.c.bf16 %v430_v5, %v429_v7  ;;  %v3830_v63 = vpop.permute.xlu1 %3829 }
  0xed   :  { %3761 = vmatpush3.bf16.msra.mxu1 %v908_v10 }
  0xee   :  { %v437_v8 = vpack.c.bf16 %v428_v6, %v427_v4 }
  0xf0   :  { %1053 = vrot.lane.b32.xlu1 %v321_v61, %s4078_s11  ;;  %3756 = vmatprep.mubr.msk.bf16.mxu0 %vm103_vm1, %v437_v8 }
  0xf2   :  { %3757 = vmatmul.mubr.msk.bf16.gmra.mxu0 %vm103_vm1, %v438_v9 }
  0xf3   :  { %3782 = vmatprep.mubr.msk.bf16.mxu0 %vm4077_vm0, %v4076_v1 }
 0x19a   :  { %v3746_v14 = vpop.f32.mrf.mxu0 }
 0x19b   :  { %v4038_v16 = vadd.low.f32.bf16 %v3746_v14, %v3800_v12 }
 0x19c   :  { %v513_v15 = vpop.f32.mrf.mxu0 }
 0x19d   :  { %v4271_v18 = vadd.low.f32.bf16 %v513_v15, %v3795_v11  ;;  %v666_v22 = vsel %vm656_vm3, %v4038_v16, -inf }
 0x19e   :  { %v3747_v17 = vpop.f32.mrf.mxu0 }
 0x19f   :  { %v4040_v19 = vadd.high.f32.bf16 %v3747_v17, %v3800_v12  ;;  %v657_v27 = vsel %vm656_vm3, %v4271_v18, -inf }
 0x1a0   :  { %v516_v21 = vpop.f32.mrf.mxu0 }
 0x1a1   :  { %v667_v23 = vsel %vm656_vm3, %v4040_v19, -inf  ;;  %v4275_v24 = vadd.high.f32.bf16 %v516_v21, %v3795_v11 }
 0x1a2   :  { %v668_v25 = vmax.f32 %v666_v22, %v667_v23  ;;  %v3750_v26 = vpop.f32.mrf.mxu0 }
 0x1a3   :  { %v658_v28 = vsel %vm656_vm3, %v4275_v24, -inf  ;;  %v4281_v33 = vadd.low.f32.bf16 %v3750_v26, %v3810_v20 }
 0x1a4   :  { %v669_v29 = vrot.slane %v668_v25, 4  ;;  %v659_v30 = vmax.f32 %v657_v27, %v658_v28  ;;  %v529_v31 = vpop.f32.mrf.mxu0 }
 0x1a5   :  { %v4283_v38 = vadd.low.f32.bf16 %v529_v31, %v3805_v13  ;;  %v684_v43 = vsel %vm656_vm3, %v4281_v33, -inf }
 0x1a6   :  { %v670_v35 = vmax.f32 %v668_v25, %v669_v29  ;;  %v660_v36 = vrot.slane %v659_v30, 4  ;;  %v3751_v37 = vpop.f32.mrf.mxu0 }
 0x1a7   :  { %v4285_v39 = vadd.high.f32.bf16 %v3751_v37, %v3810_v20  ;;  %v675_v52 = vsel %vm656_vm3, %v4283_v38, -inf }
 0x1a8   :  { %v671_v40 = vrot.slane %v670_v35, 2  ;;  %v661_v41 = vmax.f32 %v659_v30, %v660_v36  ;;  %v532_v42 = vpop.f32.mrf.mxu0 }
 0x1a9   :  { %v685_v44 = vsel %vm656_vm3, %v4285_v39, -inf  ;;  %v4291_v46 = vadd.high.f32.bf16 %v532_v42, %v3805_v13 }
 0x1aa   :  { %v672_v47 = vmax.f32 %v670_v35, %v671_v40  ;;  %v662_v49 = vrot.slane %v661_v41, 2  ;;  %v686_v50 = vmax.f32 %v684_v43, %v685_v44  ;;  %v3754_v51 = vpop.f32.mrf.mxu0 }
 0x1ab   :  { %v676_v53 = vsel %vm656_vm3, %v4291_v46, -inf  ;;  %v4297_v54 = vadd.low.f32.bf16 %v3754_v51, %v3820_v34 }
 0x1ac   :  { %v673_v56 = vrot.slane %v672_v47, 1  ;;  %v663_v57 = vmax.f32 %v661_v41, %v662_v49  ;;  %v687_v59 = vrot.slane %v686_v50, 4  ;;  %v677_v60 = vmax.f32 %v675_v52, %v676_v53  ;;  %v545_v61 = vpop.f32.mrf.mxu0 }
 0x1ad   :  { %v4299_v62 = vadd.low.f32.bf16 %v545_v61, %v3815_v32  ;;  %v702_v6 = vsel %vm656_vm3, %v4297_v54, -inf }
 0x1ae   :  { %v674_v0 = vmax.f32 %v672_v47, %v673_v56  ;;  %v664_v2 = vrot.slane %v663_v57, 1  ;;  %v688_v3 = vmax.f32 %v686_v50, %v687_v59  ;;  %v678_v4 = vrot.slane %v677_v60, 4  ;;  %v3755_v5 = vpop.f32.mrf.mxu0 }
 0x1af   :  { %v4303_v7 = vadd.high.f32.bf16 %v3755_v5, %v3820_v34  ;;  %v693_v13 = vsel %vm656_vm3, %v4299_v62, -inf }
 0x1b0   :  { %v731_v8 = vsub.f32 %v4038_v16, %v674_v0  ;;  %v732_v9 = vsub.f32 %v4040_v19, %v674_v0  ;;  %v665_v48 = vmax.f32 %v663_v57, %v664_v2  ;;  %v689_v10 = vrot.slane %v688_v3, 2  ;;  %v548_v11 = vpop.f32.mrf.mxu0 }
 0x1b1   :  { %v679_v12 = vmax.f32 %v677_v60, %v678_v4  ;;  %v703_v14 = vsel %vm656_vm3, %v4303_v7, -inf  ;;  %v4309_v15 = vadd.high.f32.bf16 %v548_v11, %v3815_v32 }
 0x1b2   :  { %v749_v17 = vmul.f32 1.442695, %v731_v8  ;;  %v751_v20 = vmul.f32 1.442695, %v732_v9  ;;  %v729_v21 = vsub.f32 %v4271_v18, %v665_v48  ;;  %v730_v22 = vsub.f32 %v4275_v24, %v665_v48  ;;  %v3758_v16 = vpop.f32.mrf.mxu0 }
 0x1b3   :  { %v690_v19 = vmax.f32 %v688_v3, %v689_v10  ;;  %v680_v23 = vrot.slane %v679_v12, 2  ;;  %v704_v25 = vmax.f32 %v702_v6, %v703_v14  ;;  %v694_v26 = vsel %vm656_vm3, %v4309_v15, -inf }
 0x1b4   :  { %3985 = vpow2.f32 %v749_v17  ;;  %v745_v27 = vmul.f32 1.442695, %v729_v21  ;;  %v747_v28 = vmul.f32 1.442695, %v730_v22  ;;  %v695_v29 = vmax.f32 %v693_v13, %v694_v26  ;;  %v561_v30 = vpop.f32.mrf.mxu0 }
 0x1b5   :  { %3987 = vpow2.f32 %v751_v20  ;;  %v691_v31 = vrot.slane %v690_v19, 1  ;;  %v681_v32 = vmax.f32 %v679_v12, %v680_v23  ;;  %v705_v34 = vrot.slane %v704_v25, 4 }
 0x1b6   :  { %3989 = vpow2.f32 %v745_v27  ;;  %v696_v18 = vrot.slane %v695_v29, 4  ;;  %v4315_v35 = vadd.low.f32.bf16 %v3758_v16, %v3830_v63  ;;  %v4317_v24 = vadd.low.f32.bf16 %v561_v30, %v3825_v55  ;;  %v3759_v36 = vpop.f32.mrf.mxu0 }
 0x1b7   :  { %3991 = vpow2.f32 %v747_v28  ;;  %v692_v37 = vmax.f32 %v690_v19, %v691_v31  ;;  %v682_v40 = vrot.slane %v681_v32, 1  ;;  %v706_v41 = vmax.f32 %v704_v25, %v705_v34 }
 0x1b8   :  { %v697_v42 = vmax.f32 %v695_v29, %v696_v18  ;;  %v720_v43 = vsel %vm656_vm3, %v4315_v35, -inf  ;;  %v4321_v44 = vadd.high.f32.bf16 %v3759_v36, %v3830_v63  ;;  %v564_v47 = vpop.f32.mrf.mxu0  ;;  %v711_v56 = vsel %vm656_vm3, %v4317_v24, -inf }
 0x1b9   :  { %v735_v49 = vsub.f32 %v4281_v33, %v692_v37  ;;  %v736_v50 = vsub.f32 %v4285_v39, %v692_v37  ;;  %v683_v51 = vmax.f32 %v681_v32, %v682_v40  ;;  %v707_v52 = vrot.slane %v706_v41, 2 }
 0x1ba   :  { %v698_v53 = vrot.slane %v697_v42, 2  ;;  %v721_v57 = vsel %vm656_vm3, %v4321_v44, -inf  ;;  %v4329_v59 = vadd.high.f32.bf16 %v564_v47, %v3825_v55 }
 0x1bb   :  { %v757_v60 = vmul.f32 1.442695, %v735_v49  ;;  %v759_v61 = vmul.f32 1.442695, %v736_v50  ;;  %v733_v63 = vsub.f32 %v4283_v38, %v683_v51  ;;  %v734_v0 = vsub.f32 %v4291_v46, %v683_v51 }
 0x1bc   :  { %v708_v33 = vmax.f32 %v706_v41, %v707_v52  ;;  %v699_v2 = vmax.f32 %v697_v42, %v698_v53  ;;  %v722_v39 = vmax.f32 %v720_v43, %v721_v57  ;;  %v712_v3 = vsel %vm656_vm3, %v4329_v59, -inf }
 0x1bd   :  { %3993 = vpow2.f32 %v757_v60  ;;  %v753_v4 = vmul.f32 1.442695, %v733_v63  ;;  %v755_v5 = vmul.f32 1.442695, %v734_v0  ;;  %v713_v6 = vmax.f32 %v711_v56, %v712_v3 }
 0x1be   :  { %3995 = vpow2.f32 %v759_v61  ;;  %v709_v8 = vrot.slane %v708_v33, 1  ;;  %v700_v55 = vrot.slane %v699_v2, 1  ;;  %v723_v9 = vrot.slane %v722_v39, 4 }
 0x1bf   :  { %3997 = vpow2.f32 %v753_v4  ;;  %v714_v48 = vrot.slane %v713_v6, 4 }
 0x1c0   :  { %3999 = vpow2.f32 %v755_v5  ;;  %v710_v38 = vmax.f32 %v708_v33, %v709_v8  ;;  %v701_v10 = vmax.f32 %v699_v2, %v700_v55  ;;  %v724_v46 = vmax.f32 %v722_v39, %v723_v9 }
 0x1c1   :  { %v4335_v11 = vpop.eup %3985  ;;  %v715_v12 = vmax.f32 %v713_v6, %v714_v48 }
 0x1c2   :  { %v4337_v13 = vpop.eup %3987  ;;  %v786_v14 = vsel %vm656_vm3, %v4335_v11, 0.0  ;;  %v739_v17 = vsub.f32 %v4297_v54, %v710_v38  ;;  %v740_v20 = vsub.f32 %v4303_v7, %v710_v38  ;;  %v737_v21 = vsub.f32 %v4299_v62, %v701_v10 }
 0x1c3   :  { %v4344_v22 = vpop.eup %3989  ;;  %v787_v16 = vsel %vm656_vm3, %v4337_v13, 0.0  ;;  %v738_v19 = vsub.f32 %v4309_v15, %v701_v10  ;;  %v725_v23 = vrot.slane %v724_v46, 2  ;;  %v716_v25 = vrot.slane %v715_v12, 2 }
 0x1c4   :  { %v4349_v26 = vpop.eup %3991  ;;  %v788_v27 = vadd.f32 %v787_v16, %v786_v14  ;;  %v777_v28 = vsel %vm656_vm3, %v4344_v22, 0.0  ;;  %v765_v54 = vmul.f32 1.442695, %v739_v17  ;;  %v767_v29 = vmul.f32 1.442695, %v740_v20 }
 0x1c5   :  { %v778_v62 = vsel %vm656_vm3, %v4349_v26, 0.0  ;;  %v761_v7 = vmul.f32 1.442695, %v737_v21  ;;  %v763_v30 = vmul.f32 1.442695, %v738_v19  ;;  %v726_v31 = vmax.f32 %v724_v46, %v725_v23 }
 0x1c6   :  { %v789_v32 = vrot.slane %v788_v27, 4  ;;  %v779_v34 = vadd.f32 %v778_v62, %v777_v28  ;;  %4001 = vpow2.f32 %v765_v54  ;;  %v717_v15 = vmax.f32 %v715_v12, %v716_v25 }
 0x1c7   :  { %4003 = vpow2.f32 %v767_v29  ;;  %v727_v18 = vrot.slane %v726_v31, 1 }
 0x1c8   :  { %v790_v36 = vadd.f32 %v789_v32, %v788_v27  ;;  %v780_v37 = vrot.slane %v779_v34, 4  ;;  %4005 = vpow2.f32 %v761_v7  ;;  %v718_v40 = vrot.slane %v717_v15, 1 }
 0x1c9   :  { %4007 = vpow2.f32 %v763_v30  ;;  %v728_v41 = vmax.f32 %v726_v31, %v727_v18 }
 0x1ca   :  { %v4355_v42 = vpop.eup %3993  ;;  %v791_v43 = vrot.slane %v790_v36, 2  ;;  %v781_v47 = vadd.f32 %v780_v37, %v779_v34  ;;  %v719_v49 = vmax.f32 %v717_v15, %v718_v40 }
 0x1cb   :  { %v4357_v50 = vpop.eup %3995  ;;  %v804_v51 = vsel %vm656_vm3, %v4355_v42, 0.0  ;;  %v743_v52 = vsub.f32 %v4315_v35, %v728_v41  ;;  %v744_v53 = vsub.f32 %v4321_v44, %v728_v41 }
 0x1cc   :  { %v4363_v56 = vpop.eup %3997  ;;  %v792_v57 = vadd.f32 %v791_v43, %v790_v36  ;;  %v782_v60 = vrot.slane %v781_v47, 2  ;;  %v805_v61 = vsel %vm656_vm3, %v4357_v50, 0.0  ;;  %v741_v63 = vsub.f32 %v4317_v24, %v719_v49 }
 0x1cd   :  { %v4368_v0 = vpop.eup %3999  ;;  %v806_v33 = vadd.f32 %v805_v61, %v804_v51  ;;  %v795_v2 = vsel %vm656_vm3, %v4363_v56, 0.0  ;;  %v773_v39 = vmul.f32 1.442695, %v743_v52  ;;  %v775_v3 = vmul.f32 1.442695, %v744_v53 }
 0x1ce   :  { %v793_v35 = vrot.slane %v792_v57, 1  ;;  %v783_v4 = vadd.f32 %v782_v60, %v781_v47  ;;  %v796_v44 = vsel %vm656_vm3, %v4368_v0, 0.0  ;;  %v742_v5 = vsub.f32 %v4329_v59, %v719_v49 }
 0x1cf   :  { %v807_v6 = vrot.slane %v806_v33, 4  ;;  %v797_v8 = vadd.f32 %v796_v44, %v795_v2  ;;  %4009 = vpow2.f32 %v773_v39  ;;  %v769_v55 = vmul.f32 1.442695, %v741_v63 }
 0x1d0   :  { %v794_v24 = vadd.f32 %v793_v35, %v792_v57  ;;  %v784_v9 = vrot.slane %v783_v4, 1  ;;  %4011 = vpow2.f32 %v775_v3  ;;  %v771_v48 = vmul.f32 1.442695, %v742_v5 }
 0x1d1   :  { %v808_v38 = vadd.f32 %v807_v6, %v806_v33  ;;  %v798_v10 = vrot.slane %v797_v8, 4  ;;  %4013 = vpow2.f32 %v769_v55 }
 0x1d2   :  { %4015 = vrcp.f32 %v794_v24  ;;  %v785_v46 = vadd.f32 %v784_v9, %v783_v4 }
 0x1d3   :  { %v4375_v12 = vpop.eup %4001  ;;  %v809_v14 = vrot.slane %v808_v38, 2  ;;  %v799_v17 = vadd.f32 %v798_v10, %v797_v8  ;;  %4017 = vpow2.f32 %v771_v48 }
 0x1d4   :  { %v4377_v20 = vpop.eup %4003  ;;  %v822_v59 = vsel %vm656_vm3, %v4375_v12, 0.0  ;;  %4019 = vrcp.f32 %v785_v46 }
 0x1d5   :  { %v4381_v21 = vpop.eup %4005  ;;  %v810_v16 = vadd.f32 %v809_v14, %v808_v38  ;;  %v800_v19 = vrot.slane %v799_v17, 2  ;;  %v823_v23 = vsel %vm656_vm3, %v4377_v20, 0.0 }
 0x1d6   :  { %v4385_v25 = vpop.eup %4007  ;;  %v824_v27 = vadd.f32 %v823_v23, %v822_v59  ;;  %v813_v28 = vsel %vm656_vm3, %v4381_v21, 0.0 }
 0x1d7   :  { %v811_v54 = vrot.slane %v810_v16, 1  ;;  %v801_v29 = vadd.f32 %v800_v19, %v799_v17  ;;  %v814_v62 = vsel %vm656_vm3, %v4385_v25, 0.0 }
 0x1d8   :  { %v825_v7 = vrot.slane %v824_v27, 4  ;;  %v815_v30 = vadd.f32 %v814_v62, %v813_v28 }
 0x1d9   :  { %v802_v31 = vrot.slane %v801_v29, 1  ;;  %v812_v32 = vadd.f32 %v811_v54, %v810_v16 }
 0x1da   :  { %v826_v34 = vadd.f32 %v825_v7, %v824_v27  ;;  %v816_v15 = vrot.slane %v815_v30, 4 }
 0x1db   :  { %v803_v18 = vadd.f32 %v802_v31, %v801_v29  ;;  %4021 = vrcp.f32 %v812_v32 }
 0x1dc   :  { %v4391_v36 = vpop.eup %4009  ;;  %v827_v37 = vrot.slane %v826_v34, 2  ;;  %v817_v40 = vadd.f32 %v816_v15, %v815_v30 }
 0x1dd   :  { %v4393_v41 = vpop.eup %4011  ;;  %v840_v43 = vsel %vm656_vm3, %v4391_v36, 0.0  ;;  %4023 = vrcp.f32 %v803_v18 }
 0x1de   :  { %v4397_v47 = vpop.eup %4013  ;;  %v828_v49 = vadd.f32 %v827_v37, %v826_v34  ;;  %v818_v51 = vrot.slane %v817_v40, 2  ;;  %v841_v52 = vsel %vm656_vm3, %v4393_v41, 0.0 }
 0x1df   :  { %v4016_v53 = vpop.eup %4015  ;;  %v842_v57 = vadd.f32 %v841_v52, %v840_v43  ;;  %v831_v60 = vsel %vm656_vm3, %v4397_v47, 0.0 }
 0x1e0   :  { %v4018_v61 = vpop.eup %4017  ;;  %v829_v63 = vrot.slane %v828_v49, 1  ;;  %v819_v33 = vadd.f32 %v818_v51, %v817_v40  ;;  %v860_v39 = vmul.f32 %v4016_v53, %v4337_v13  ;;  %v859_v4 = vmul.f32 %v4016_v53, %v4335_v11 }
 0x1e1   :  { %v4020_v2 = vpop.eup %4019  ;;  %v843_v3 = vrot.slane %v842_v57, 4  ;;  %v832_v35 = vsel %vm656_vm3, %v4018_v61, 0.0 }
 0x1e2   :  { %v820_v44 = vrot.slane %v819_v33, 1  ;;  %v833_v5 = vadd.f32 %v832_v35, %v831_v60  ;;  %v857_v6 = vmul.f32 %v4020_v2, %v4344_v22  ;;  %v858_v8 = vmul.f32 %v4020_v2, %v4349_v26 }
 0x1e3   :  { %v844_v55 = vadd.f32 %v843_v3, %v842_v57  ;;  %v830_v24 = vadd.f32 %v829_v63, %v828_v49  ;;  %v874_v46 = vpack.c.bf16 %v860_v39, %v859_v4 }
 0x1e4   :  { %v834_v9 = vrot.slane %v833_v5, 4  ;;  %v873_v48 = vpack.c.bf16 %v858_v8, %v857_v6  ;;  %v821_v38 = vadd.f32 %v820_v44, %v819_v33 }
 0x1e5   :  { %v845_v10 = vrot.slane %v844_v55, 2  ;;  %4025 = vrcp.f32 %v830_v24 }
 0x1e6   :  { %v835_v13 = vadd.f32 %v834_v9, %v833_v5  ;;  %3762 = vmatprep.mubr.msk.bf16.mxu1 %vm656_vm3, %v873_v48  ;;  %4027 = vrcp.f32 %v821_v38 }
 0x1e7   :  { %v846_v14 = vadd.f32 %v845_v10, %v844_v55  ;;  %3763 = vmatmul.mubr.msk.bf16.vlgmr.msra.gmra.mxu1 %vm656_vm3, %v874_v46 }
 0x1e8   :  { %v4022_v11 = vpop.eup %4021  ;;  %v836_v17 = vrot.slane %v835_v13, 2 }
 0x1e9   :  { %v847_v22 = vrot.slane %v846_v14, 1  ;;  %v863_v16 = vmul.f32 %v4022_v11, %v4355_v42  ;;  %v864_v19 = vmul.f32 %v4022_v11, %v4357_v50 }
 0x1ea   :  { %v4024_v59 = vpop.eup %4023  ;;  %v837_v26 = vadd.f32 %v836_v17, %v835_v13 }
 0x1eb   :  { %v861_v23 = vmul.f32 %v4024_v59, %v4363_v56  ;;  %v862_v27 = vmul.f32 %v4024_v59, %v4368_v0  ;;  %v848_v28 = vadd.f32 %v847_v22, %v846_v14  ;;  %v876_v62 = vpack.c.bf16 %v864_v19, %v863_v16 }
 0x1ec   :  { %v838_v54 = vrot.slane %v837_v26, 1 }
 0x1ed   :  { %v875_v29 = vpack.c.bf16 %v862_v27, %v861_v23  ;;  %4029 = vrcp.f32 %v848_v28 }
 0x1ee   :  { %v839_v7 = vadd.f32 %v838_v54, %v837_v26 }
 0x1ef   :  { %3766 = vmatprep.mubr.msk.bf16.mxu1 %vm656_vm3, %v875_v29 }
 0x1f0   :  { %3767 = vmatmul.mubr.msk.bf16.gmra.mxu1 %vm656_vm3, %v876_v62  ;;  %4031 = vrcp.f32 %v839_v7 }
 0x1f2   :  { %v4026_v30 = vpop.eup %4025 }
 0x1f3   :  { %v4028_v31 = vpop.eup %4027  ;;  %v867_v42 = vmul.f32 %v4026_v30, %v4375_v12  ;;  %v868_v50 = vmul.f32 %v4026_v30, %v4377_v20 }
 0x1f4   :  { %v865_v56 = vmul.f32 %v4028_v31, %v4381_v21  ;;  %v866_v0 = vmul.f32 %v4028_v31, %v4385_v25  ;;  %v3847_v21 = vld [vmem:[%s5083_s4 + $0x8] sm:$0xff]   ;;  %v3848_v25 = vld [vmem:[%s5083_s4] sm:$0xff]  }
 0x1f5   :  { %v878_v34 = vpack.c.bf16 %v868_v50, %v867_v42  ;;  %3779 = vmatpush3.bf16.msra.mxu0 %v3847_v21 }
 0x1f6   :  { %v877_v32 = vpack.c.bf16 %v866_v0, %v865_v56  ;;  %3780 = vmatprep.subr.bf16.mxu0 %v4076_v1 }
 0x1f8   :  { %3770 = vmatprep.mubr.msk.bf16.mxu1 %vm656_vm3, %v877_v32 }
 0x1f9   :  { %3771 = vmatmul.mubr.msk.bf16.gmra.mxu1 %vm656_vm3, %v878_v34  ;;  %3781 = vmatpush3.bf16.msra.mxu0 %v3848_v25 }
 0x1fa   :  { %v4030_v15 = vpop.eup %4029 }
 0x1fb   :  { %v871_v37 = vmul.f32 %v4030_v15, %v4391_v36  ;;  %v872_v40 = vmul.f32 %v4030_v15, %v4393_v41  ;;  %v1028_v36 = vpop.permute.xlu0 %1027  ;;  %v1030_v41 = vpop.permute.xlu1 %1029 }
 0x1fd   :  { %v4032_v18 = vpop.eup %4031  ;;  %v880_v49 = vpack.c.bf16 %v872_v40, %v871_v37 }
 0x1fe   :  { %v869_v12 = vmul.f32 %v4032_v18, %v4397_v47  ;;  %v870_v43 = vmul.f32 %v4032_v18, %v4018_v61 }
 0x1ff   :  { %v1024_v47 = vpop.permute.xlu0 %1023  ;;  %v1026_v51 = vpop.permute.xlu1 %1025 }
 0x200   :  { %v879_v20 = vpack.c.bf16 %v870_v43, %v869_v12 }
 0x202   :  { %3774 = vmatprep.mubr.msk.bf16.mxu1 %vm656_vm3, %v879_v20 }
 0x203   :  { %3775 = vmatmul.mubr.msk.bf16.gmra.mxu1 %vm656_vm3, %v880_v49  ;;  %v1036_v53 = vpop.permute.xlu0 %1035  ;;  %v1038_v60 = vpop.permute.xlu1 %1037 }
 0x207   :  { %v1032_v1 = vpop.permute.xlu0 %1031  ;;  %v1034_v5 = vpop.permute.xlu1 %1033 }
 0x20b   :  { %v1044_v10 = vpop.permute.xlu0 %1043  ;;  %v1046_v17 = vpop.permute.xlu1 %1045 }
 0x20f   :  { %v1040_v29 = vpop.permute.xlu0 %1039  ;;  %v1042_v56 = vpop.permute.xlu1 %1041 }
 0x213   :  { %v1048_v18 = vpop.permute.xlu0 %1047 }
 0x2a7   :  { %v3764_v52 = vpop.f32.mrf.mxu1 }
 0x2a8   :  { %v1073_v33 = vmul.f32 %v3764_v52, %v1028_v36  ;;  %v1050_v36 = vpop.permute.xlu1 %1049 }
 0x2a9   :  { %v944_v57 = vpop.f32.mrf.mxu1 }
 0x2aa   :  { %v1071_v39 = vmul.f32 %v1024_v47, %v944_v57  ;;  %v1096_v6 = vsel %vm103_vm1, %v1073_v33, 0.0 }
 0x2ab   :  { %v3765_v61 = vpop.f32.mrf.mxu1 }
 0x2ac   :  { %v1074_v63 = vmul.f32 %v3765_v61, %v1030_v41  ;;  %v1087_v8 = vsel %vm103_vm1, %v1071_v39, 0.0 }
 0x2ad   :  { %v947_v2 = vpop.f32.mrf.mxu1 }
 0x2ae   :  { %v1072_v3 = vmul.f32 %v1026_v51, %v947_v2  ;;  %v1097_v35 = vsel %vm103_vm1, %v1074_v63, 0.0  ;;  %v1052_v2 = vpop.permute.xlu0 %1051 }
 0x2af   :  { %v1098_v55 = vadd.f32 %v1097_v35, %v1096_v6 }
 0x2b0   :  { %v1088_v4 = vsel %vm103_vm1, %v1072_v3, 0.0  ;;  %v3768_v44 = vpop.f32.mrf.mxu1 }
 0x2b1   :  { %v1089_v9 = vadd.f32 %v1088_v4, %v1087_v8  ;;  %v1077_v48 = vmul.f32 %v3768_v44, %v1036_v53  ;;  %v1099_v14 = vrot.slane %v1098_v55, 4  ;;  %v1054_v4 = vpop.permute.xlu1 %1053 }
 0x2b2   :  { %v960_v24 = vpop.f32.mrf.mxu1 }
 0x2b3   :  { %v1075_v46 = vmul.f32 %v1032_v1, %v960_v24  ;;  %v1090_v22 = vrot.slane %v1089_v9, 4  ;;  %v1114_v59 = vsel %vm103_vm1, %v1077_v48, 0.0  ;;  %v1100_v62 = vadd.f32 %v1099_v14, %v1098_v55 }
 0x2b4   :  { %v3769_v38 = vpop.f32.mrf.mxu1 }
 0x2b5   :  { %v1078_v13 = vmul.f32 %v3769_v38, %v1038_v60  ;;  %v1105_v23 = vsel %vm103_vm1, %v1075_v46, 0.0  ;;  %v1091_v7 = vadd.f32 %v1090_v22, %v1089_v9  ;;  %v1101_v37 = vrot.slane %v1100_v62, 2 }
 0x2b6   :  { %v963_v11 = vpop.f32.mrf.mxu1 }
 0x2b7   :  { %v1115_v26 = vsel %vm103_vm1, %v1078_v13, 0.0  ;;  %v1076_v16 = vmul.f32 %v1034_v5, %v963_v11  ;;  %v1092_v40 = vrot.slane %v1091_v7, 2  ;;  %v1102_v61 = vadd.f32 %v1101_v37, %v1100_v62 }
 0x2b8   :  { %v1116_v19 = vadd.f32 %v1115_v26, %v1114_v59 }
 0x2b9   :  { %v1106_v27 = vsel %vm103_vm1, %v1076_v16, 0.0  ;;  %v3772_v28 = vpop.f32.mrf.mxu1  ;;  %v1093_v52 = vadd.f32 %v1092_v40, %v1091_v7  ;;  %v1103_v8 = vrot.slane %v1102_v61, 1 }
 0x2ba   :  { %v1107_v54 = vadd.f32 %v1106_v27, %v1105_v23  ;;  %v1117_v30 = vrot.slane %v1116_v19, 4  ;;  %v1081_v50 = vmul.f32 %v3772_v28, %v1044_v10 }
 0x2bb   :  { %v976_v31 = vpop.f32.mrf.mxu1  ;;  %v1094_v44 = vrot.slane %v1093_v52, 1  ;;  %v1104_v26 = vadd.f32 %v1103_v8, %v1102_v61  ;;  %v72_v8 = vld [vmem:[%s5086_s7 + $0x2] ss:$0 sm:$0xff] }
 0x2bc   :  { %v1108_v42 = vrot.slane %v1107_v54, 4  ;;  %v1079_v34 = vmul.f32 %v1040_v29, %v976_v31  ;;  %v1118_v12 = vadd.f32 %v1117_v30, %v1116_v19  ;;  %v1132_v49 = vsel %vm103_vm1, %v1081_v50, 0.0 }
 0x2bd   :  { %v3773_v0 = vpop.f32.mrf.mxu1 }
 0x2be   :  { %v1109_v32 = vadd.f32 %v1108_v42, %v1107_v54  ;;  %v1082_v15 = vmul.f32 %v3773_v0, %v1046_v17  ;;  %v1123_v47 = vsel %vm103_vm1, %v1079_v34, 0.0  ;;  %v1119_v63 = vrot.slane %v1118_v12, 2 }
 0x2bf   :  { %v979_v43 = vpop.f32.mrf.mxu1  ;;  %v1095_v17 = vadd.f32 %v1094_v44, %v1093_v52 }
 0x2c0   :  { %v1110_v20 = vrot.slane %v1109_v32, 2  ;;  %v1133_v21 = vsel %vm103_vm1, %v1082_v15, 0.0  ;;  %v1080_v25 = vmul.f32 %v1042_v56, %v979_v43  ;;  %v1120_v55 = vadd.f32 %v1119_v63, %v1118_v12 }
 0x2c1   :  { %v1134_v41 = vadd.f32 %v1133_v21, %v1132_v49  ;;  %v1159_v7 = vpack.c.bf16 %v1095_v17, %v1095_v17  ;;  %v1160_v56 = vpack.c.bf16 %v1104_v26, %v1104_v26  ;;  %v1291_v26 = vld [vmem:[%s5084_s5 + $0x80] sm:$0xff] }
 0x2c2   :  { %v1124_v51 = vsel %vm103_vm1, %v1080_v25, 0.0  ;;  %v1111_v33 = vadd.f32 %v1110_v20, %v1109_v32  ;;  %v1121_v16 = vrot.slane %v1120_v55, 1 }
 0x2c3   :  { %v1135_v53 = vrot.slane %v1134_v41, 4  ;;  %v1125_v57 = vadd.f32 %v1124_v51, %v1123_v47  ;;  %v3776_v60 = vpop.f32.mrf.mxu1  ;;  %v1180_v20 = vunpack.c.l.b16 %v1160_v56 }
 0x2c4   :  { %v1085_v35 = vmul.f32 %v3776_v60, %v1052_v2  ;;  %v1112_v24 = vrot.slane %v1111_v33, 1  ;;  %v1122_v0 = vadd.f32 %v1121_v16, %v1120_v55  ;;  %v1299_v16 = vld [vmem:[%s5084_s5 + $0xc0] sm:$0xff] }
 0x2c5   :  { %v1136_v39 = vadd.f32 %v1135_v53, %v1134_v41  ;;  %v1126_v3 = vrot.slane %v1125_v57, 4  ;;  %v992_v1 = vpop.f32.mrf.mxu1 }
 0x2c6   :  { %v1083_v10 = vmul.f32 %v1048_v18, %v992_v1  ;;  %v1150_v13 = vsel %vm103_vm1, %v1085_v35, 0.0  ;;  %v1113_v19 = vadd.f32 %v1112_v24, %v1111_v33  ;;  %v1179_v18 = vunpack.c.l.b16 %v1159_v7  ;;  %v1283_v7 = vld [vmem:[%s5084_s5 + $0x40] sm:$0xff] }
 0x2c7   :  { %v1127_v5 = vadd.f32 %v1126_v3, %v1125_v57  ;;  %v3777_v6 = vpop.f32.mrf.mxu1  ;;  %v1137_v48 = vrot.slane %v1136_v39, 2  ;;  %v1162_v49 = vpack.c.bf16 %v1122_v0, %v1122_v0 }
 0x2c8   :  { %v1086_v9 = vmul.f32 %v3777_v6, %v1054_v4  ;;  %v1141_v54 = vsel %vm103_vm1, %v1083_v10, 0.0  ;;  %v1161_v31 = vpack.c.bf16 %v1113_v19, %v1113_v19  ;;  %v1188_v41 = vsel %vm1187_vm4, %v1180_v20, %v1179_v18  ;;  %v1294_v19 = vld [vmem:[%s5084_s5 + $0x98] sm:$0xff] }
 0x2c9   :  { %v1128_v38 = vrot.slane %v1127_v5, 2  ;;  %v995_v46 = vpop.f32.mrf.mxu1  ;;  %v1138_v27 = vadd.f32 %v1137_v48, %v1136_v39  ;;  %v1182_v57 = vunpack.c.l.b16 %v1162_v49  ;;  %v4037_v48 = vld [vmem:[%s5080_s1] sm:$0xff]  ;;  %s3279_s1 = sshll.u32 %s4081_s13, 4  ;;  %s3280_s1 = int_to_ptr.vmem [resolvable:$true] %s3279_s1 }
 0x2ca   :  { %v1151_v14 = vsel %vm103_vm1, %v1086_v9, 0.0  ;;  %v1084_v11 = vmul.f32 %v1050_v36, %v995_v46  ;;  %v1181_v40 = vunpack.c.l.b16 %v1161_v31  ;;  %s4054_s14 = scalar_lea.vmem %s3280_s1, 128  ;;  %p4059_p1 = scmp.lt.s32.totalorder %s3280_s1, %s3280_s1 }
 0x2cb   :  { %v1129_v22 = vadd.f32 %v1128_v38, %v1127_v5  ;;  %v1152_v59 = vadd.f32 %v1151_v14, %v1150_v13  ;;  %v1139_v32 = vrot.slane %v1138_v27, 1  ;;  %p4055_p0 = scmp.ne.s32.totalorder %s3280_s1, %s4054_s14  ;;  %p4060_p2 = scmp.lt.s32.totalorder %s4054_s14, %s4054_s14 }
 0x2cc   :  { %v1142_v23 = vsel %vm103_vm1, %v1084_v11, 0.0  ;;  %v1190_v51 = vsel %vm1189_vm5, %v1181_v40, %v1188_v41  ;;  %v1304_v40 = vld [vmem:[%s5084_s5 + $0xe8] sm:$0xff]  ;;  %v73_v41 = vld [vmem:[%s5086_s7 + $0x3] ss:$0 sm:$0xff] }
 0x2cd   :  { %v1130_v28 = vrot.slane %v1129_v22, 1  ;;  %v1153_v29 = vrot.slane %v1152_v59, 4  ;;  %v1143_v62 = vadd.f32 %v1142_v23, %v1141_v54  ;;  %v1140_v21 = vadd.f32 %v1139_v32, %v1138_v27  ;;  %v1302_v27 = vld [vmem:[%s5084_s5 + $0xd8] sm:$0xff]  ;;  %v1292_v32 = vld [vmem:[%s5084_s5 + $0x88] sm:$0xff]  ;;  %p4061_p3 = por %p4060_p2, %p4059_p1 }
 0x2ce   :  { %v1192_v63 = vsel %vm1191_vm6, %v1182_v57, %v1190_v51  ;;  %v3350_v23 = vcombine.high %v1291_v26, %v1299_v16  ;;  %v3355_v54 = vcombine.low %v1294_v19, %v1302_v27  ;;  %v74_v51 = vld [vmem:[%s5086_s7 + $0x4] ss:$0 sm:$0xff]  ;;  %v1284_v57 = vld [vmem:[%s5084_s5 + $0x48] sm:$0xff] }
 0x2cf   :  { %v1154_v30 = vadd.f32 %v1153_v29, %v1152_v59  ;;  %v1131_v42 = vadd.f32 %v1130_v28, %v1129_v22  ;;  %v1144_v50 = vrot.slane %v1143_v62, 4  ;;  %v1164_v60 = vpack.c.bf16 %v1140_v21, %v1140_v21  ;;  %p4062_p4 = pnand %p4061_p3, %p4055_p0 }
 0x2d0   :  { %v3349_v28 = vcombine.low %v1291_v26, %v1299_v16  ;;  %v3356_v29 = vcombine.high %v1294_v19, %v1302_v27  ;;  %1564 = vmatprep.subr.bf16.mxu0 %v3350_v23  ;;  %v3854_v26 = vld [vmem:[%s5085_s6 + $0xf8] sm:$0xff]   ;;  %v1279_v16 = vld [vmem:[%s5084_s5 + $0x20] sm:$0xff] }
 0x2d1   :  { %v1155_v34 = vrot.slane %v1154_v30, 2  ;;  %v1145_v15 = vadd.f32 %v1144_v50, %v1143_v62  ;;  %v1163_v12 = vpack.c.bf16 %v1131_v42, %v1131_v42  ;;  %v1184_v3 = vunpack.c.l.b16 %v1164_v60  ;;  %v1275_v62 = vld [vmem:[%s5084_s5] sm:$0xff]  ;;  %v1286_v42 = vld [vmem:[%s5084_s5 + $0x58] sm:$0xff]  ;;  %v1280_v60 = vld [vmem:[%s5084_s5 + $0x28] sm:$0xff] }
 0x2d2   :  { %1687 = vmatprep.subr.bf16.mxu1 %v3356_v29  ;;  %v3334_v31 = vcombine.high %v1275_v62, %v1283_v7  ;;  %v3333_v50 = vcombine.low %v1275_v62, %v1283_v7  ;;  %v1287_v19 = vld [vmem:[%s5084_s5 + $0x60] sm:$0xff]  ;;  %v1305_v29 = vld [vmem:[%s5084_s5 + $0xf0] sm:$0xff] }
 0x2d3   :  { %v1156_v37 = vadd.f32 %v1155_v34, %v1154_v30  ;;  %v1146_v43 = vrot.slane %v1145_v15, 2  ;;  %v1183_v52 = vunpack.c.l.b16 %v1163_v12  ;;  %v1278_v30 = vld [vmem:[%s5084_s5 + $0x18] sm:$0xff]  ;;  %1688 = vmatpush1.bf16.msra.mxu1 %v3355_v54  ;;  %v1300_v34 = vld [vmem:[%s5084_s5 + $0xc8] sm:$0xff]  ;;  %v4080_v12 = vmov 0   ;;  %v1297_v54 = vld [vmem:[%s5084_s5 + $0xb0] sm:$0xff] }
 0x2d4   :  { %v3339_v56 = vcombine.low %v1278_v30, %v1286_v42  ;;  %v3340_v0 = vcombine.high %v1278_v30, %v1286_v42  ;;  %v3351_v18 = vcombine.low %v1292_v32, %v1300_v34  ;;  %1707 = vmatprep.mubr.bf16.mxu1 %v4080_v12  ;;  %v3342_v27 = vcombine.high %v1279_v16, %v1287_v19  ;;  %v3858_v62 = vld [vmem:[%s5085_s6 + $0xf0] sm:$0xff]  }
 0x2d5   :  { %v1157_v25 = vrot.slane %v1156_v37, 1  ;;  %v1147_v36 = vadd.f32 %v1146_v43, %v1145_v15  ;;  %v1194_v2 = vsel %vm1193_vm7, %v1183_v52, %v1192_v63  ;;  %v1296_v15 = vld [vmem:[%s5084_s5 + $0xa8] sm:$0xff]  ;;  %v3341_v7 = vcombine.low %v1279_v16, %v1287_v19  ;;  %v1281_v42 = vld [vmem:[%s5084_s5 + $0x30] sm:$0xff] }
 0x2d6   :  { %v1196_v4 = vsel %vm1195_vm8, %v1184_v3, %v1194_v2  ;;  %1689 = vmatprep.subr.bf16.mxu1 %v3340_v0  ;;  %v3359_v43 = vcombine.low %v1296_v15, %v1304_v40  ;;  %v3360_v20 = vcombine.high %v1296_v15, %v1304_v40  ;;  %v1293_v3 = vld [vmem:[%s5084_s5 + $0x90] sm:$0xff]  ;;  %v3362_v30 = vcombine.high %v1297_v54, %v1305_v29  ;;  %v3866_v15 = vld [vmem:[%s5085_s6 + $0xe0] sm:$0xff]  }
 0x2d7   :  { %v1158_v47 = vadd.f32 %v1157_v25, %v1156_v37  ;;  %v1148_v53 = vrot.slane %v1147_v36, 1  ;;  %1690 = vmatpush1.bf16.msra.mxu1 %v3339_v56  ;;  %v3352_v37 = vcombine.high %v1292_v32, %v1300_v34  ;;  %v3862_v56 = vld [vmem:[%s5085_s6 + $0xe8] sm:$0xff]   ;;  %v3361_v0 = vcombine.low %v1297_v54, %v1305_v29  ;;  %v3868_v40 = vld [vmem:[%s5085_s6 + $0xa0] sm:$0xff]  }
 0x2d8   :  { %1769 = vmatprep.subr.bf16.mxu1 %v3360_v20  ;;  %v3864_v34 = vld [vmem:[%s5085_s6 + $0xa8] sm:$0xff]   ;;  %v3852_v20 = vld [vmem:[%s5085_s6 + $0x30] sm:$0xff]   ;;  %v1339_v19 = vsub.s32 7, %v4204_v45 }
 0x2d9   :  { %v1149_v61 = vadd.f32 %v1148_v53, %v1147_v36  ;;  %v1166_v33 = vpack.c.bf16 %v1158_v47, %v1158_v47  ;;  %v1276_v53 = vld [vmem:[%s5084_s5 + $0x8] sm:$0xff] }
 0x2da   :  { %v3336_v2 = vcombine.high %v1276_v53, %v1284_v57 }
 0x2db   :  { %v1165_v39 = vpack.c.bf16 %v1149_v61, %v1149_v61  ;;  %v1186_v35 = vunpack.c.l.b16 %v1166_v33  ;;  %v1288_v61 = vld [vmem:[%s5084_s5 + $0x68] sm:$0xff] }
 0x2dd   :  { %v1185_v1 = vunpack.c.l.b16 %v1165_v39  ;;  %v3344_v39 = vcombine.high %v1280_v60, %v1288_v61 }
 0x2df   :  { %v1198_v44 = vsel %vm1197_vm9, %v1185_v1, %v1196_v4  ;;  %v1301_v1 = vld [vmem:[%s5084_s5 + $0xd0] sm:$0xff]  ;;  %v1306_v4 = vld [vmem:[%s5084_s5 + $0xf8] sm:$0xff] }
 0x2e0   :  { %v1200_v5 = vsel %vm1199_vm10, %v1186_v35, %v1198_v44  ;;  %v1298_v35 = vld [vmem:[%s5084_s5 + $0xb8] sm:$0xff]  ;;  %v3335_v44 = vcombine.low %v1276_v53, %v1284_v57  ;;  %v3869_v53 = vld [vmem:[%s5085_s6 + $0x48] sm:$0xff]  }
 0x2e1   :  { %v1201_v6 = vpack.c.b16 %v1200_v5, %v1200_v5  ;;  %v3343_v5 = vcombine.low %v1280_v60, %v1288_v61  ;;  %v3870_v57 = vld [vmem:[%s5085_s6 + $0xd8] sm:$0xff]   ;;  %v3871_v60 = vld [vmem:[%s5085_s6 + $0x8] sm:$0xff]  }
 0x2e2   :  { %v3872_v61 = vld [vmem:[%s5085_s6 + $0x98] sm:$0xff]  }
 0x2e3   :  { %3783 = vmatmul.mubr.msk.bf16.vlgmr.msra.gmra.mxu0 %vm103_vm1, %v1201_v6  ;;  %v3354_v6 = vcombine.high %v1293_v3, %v1301_v1 }
 0x2e4   :  { %1565 = vmatpush1.bf16.msra.mxu0 %v3349_v28  ;;  %1584 = vmatprep.mubr.bf16.mxu0 %v4080_v12  ;;  %v3856_v28 = vld [vmem:[%s5085_s6 + $0xb8] sm:$0xff]  }
 0x2e5   :  { %1566 = vmatprep.subr.bf16.mxu0 %v3334_v31  ;;  %v3860_v31 = vld [vmem:[%s5085_s6 + $0xb0] sm:$0xff]  }
 0x2e8   :  { %1567 = vmatpush1.bf16.msra.mxu0 %v3333_v50  ;;  %v1289_v50 = vld [vmem:[%s5084_s5 + $0x70] sm:$0xff] }
 0x2e9   :  { %1605 = vmatprep.subr.bf16.mxu0 %v3352_v37  ;;  %v3346_v32 = vcombine.high %v1281_v42, %v1289_v50  ;;  %v3849_v37 = vld [vmem:[%s5085_s6 + $0x78] sm:$0xff]  }
 0x3a3   :  { %v1251_v55 = vpop.f32.mrf.mxu0 }
 0x3a4   :  { %v1252_v24 = vadd.f32 %v1251_v55, %v72_v8  ;;  %v3364_v8 = vcombine.high %v1298_v35, %v1306_v4  ;;  %v1277_v55 = vld [vmem:[%s5084_s5 + $0x10] sm:$0xff] }
 0x3a5   :  { %v3784_v9 = vpop.f32.mrf.mxu0 }
 0x3a6   :  { %v1257_v38 = vadd.f32 %v4037_v48, %v1252_v24  ;;  %v1285_v24 = vld [vmem:[%s5084_s5 + $0x50] sm:$0xff]  ;;  %v1282_v9 = vld [vmem:[%s5084_s5 + $0x38] sm:$0xff] }
 0x3a7   :  { %v1254_v10 = vpop.f32.mrf.mxu0  ;;  %v1290_v48 = vld [vmem:[%s5084_s5 + $0x78] sm:$0xff] }
 0x3a8   :  { %v1258_v46 = vsel %vm103_vm1, %v1257_v38, 0.0  ;;  %v3363_v10 = vcombine.low %v1298_v35, %v1306_v4  ;;  %v3878_v35 = vld [vmem:[%s5085_s6 + $0x178] sm:$0xff]   ;;  %v3879_v4 = vld [vmem:[%s5085_s6 + $0x88] sm:$0xff]  }
 0x3a9   :  { %1259 = vadd.xlane.f32.xlu0 %v1258_v46  ;;  %v3785_v13 = vpop.f32.mrf.mxu0  ;;  %v3338_v46 = vcombine.high %v1277_v55, %v1285_v24 }
 0x3aa   :  { %v3348_v13 = vcombine.high %v1282_v9, %v1290_v48 }
 0x432   :  { %v1260_v14 = vpop.xlane.xlu0 %1259 }
 0x433   :  { %v1262_v11 = vmul.f32 0.03125, %v1260_v14  ;;  %v1295_v14 = vld [vmem:[%s5084_s5 + $0xa0] sm:$0xff] }
 0x435   :  { %v1263_v17 = vsub.f32 %v1257_v38, %v1262_v11  ;;  %v3353_v38 = vcombine.low %v1293_v3, %v1301_v1  ;;  %v1303_v11 = vld [vmem:[%s5084_s5 + $0xe0] sm:$0xff]  ;;  %v3876_v3 = vld [vmem:[%s5085_s6 + $0x90] sm:$0xff]   ;;  %v3877_v1 = vld [vmem:[%s5085_s6 + $0xc8] sm:$0xff]  }
 0x436   :  { %v3357_v23 = vcombine.low %v1295_v14, %v1303_v11 }
 0x437   :  { %v1264_v22 = vmul.f32 %v1263_v17, %v1263_v17 }
 0x439   :  { %v1265_v59 = vsel %vm103_vm1, %v1264_v22, 0.0  ;;  %v3347_v22 = vcombine.low %v1282_v9, %v1290_v48  ;;  %v3886_v48 = vld [vmem:[%s5085_s6 + $0x1f8] sm:$0xff]  }
 0x43a   :  { %1266 = vadd.xlane.f32.xlu1 %v1265_v59  ;;  %v3358_v59 = vcombine.high %v1295_v14, %v1303_v11 }
 0x4c3   :  { %v1267_v49 = vpop.xlane.xlu1 %1266 }
 0x4c4   :  { %v1268_v21 = vmul.f32 0.03125, %v1267_v49  ;;  %v3853_v49 = vld [vmem:[%s5085_s6 + $0x68] sm:$0xff]  }
 0x4c6   :  { %v1269_v25 = vadd.f32 1e-05, %v1268_v21  ;;  %v3855_v21 = vld [vmem:[%s5085_s6 + $0x28] sm:$0xff]  }
 0x4c8   :  { %4033 = vrsqrt.f32 %v1269_v25  ;;  %v3857_v25 = vld [vmem:[%s5085_s6 + $0x60] sm:$0xff]  }
 0x4d5   :  { %v4034_v36 = vpop.eup %4033 }
 0x4d6   :  { %v1271_v47 = vmul.f32 %v4034_v36, %v1263_v17  ;;  %v3337_v17 = vcombine.low %v1277_v55, %v1285_v24  ;;  %v3859_v36 = vld [vmem:[%s5085_s6 + $0x20] sm:$0xff]   ;;  %v1335_v55 = vsub.s32 6, %v4204_v45 }
 0x4d8   :  { %v1272_v52 = vmul.f32 %v1271_v47, %v73_v41  ;;  %v3861_v41 = vld [vmem:[%s5085_s6 + $0x58] sm:$0xff]  }
 0x4d9   :  { %v3863_v47 = vld [vmem:[%s5085_s6 + $0x18] sm:$0xff]  }
 0x4da   :  { %v4515_v63 = vadd.f32 %v1272_v52, %v74_v51  ;;  %v3865_v51 = vld [vmem:[%s5085_s6 + $0x50] sm:$0xff]  }
 0x4db   :  { %v3867_v52 = vld [vmem:[%s5085_s6 + $0x10] sm:$0xff]  }
 0x4dc   :  { %v4519_v33 = vpack.c.bf16 %v4515_v63, %v4515_v63 }
 0x4de   :  { %3365 = vmatmul.mubr.msk.bf16.vlgmr.msra.gmra.mxu0 %vm103_vm1, %v4519_v33  ;;  %3368 = vmatmul.mubr.msk.bf16.vlgmr.msra.gmra.mxu1 %vm103_vm1, %v4519_v33 }
 0x4df   :  { %1606 = vmatpush1.bf16.msra.mxu0 %v3351_v18  ;;  %1770 = vmatpush1.bf16.msra.mxu1 %v3359_v43  ;;  %v3345_v18 = vcombine.low %v1281_v42, %v1289_v50  ;;  %v3850_v43 = vld [vmem:[%s5085_s6 + $0x38] sm:$0xff]  }
 0x4e0   :  { %1607 = vmatprep.subr.bf16.mxu0 %v3336_v2  ;;  %1771 = vmatprep.subr.bf16.mxu1 %v3344_v39  ;;  %v3874_v2 = vld [vmem:[%s5085_s6 + $0xd0] sm:$0xff]   ;;  %v3875_v39 = vld [vmem:[%s5085_s6] sm:$0xff]  }
 0x4e1   :  { %1625 = vmatprep.mubr.bf16.mxu0 %v4080_v12  ;;  %1789 = vmatprep.mubr.bf16.mxu1 %v4080_v12 }
 0x4e3   :  { %1608 = vmatpush1.bf16.msra.mxu0 %v3335_v44  ;;  %1772 = vmatpush1.bf16.msra.mxu1 %v3343_v5  ;;  %v3289_v44 = vld [vmem:[%s5086_s7 + $0x45] ss:$8 sm:$0xf] }
 0x4e4   :  { %1646 = vmatprep.subr.bf16.mxu0 %v3354_v6  ;;  %1851 = vmatprep.subr.bf16.mxu1 %v3364_v8  ;;  %v3290_v5 = vld [vmem:[%s5086_s7 + $0x45] ss:$8 sm:$0xf0] }
 0x4e5   :  { %v3881_v6 = vld [vmem:[%s5085_s6 + $0xc0] sm:$0xff]   ;;  %v4697_v24 = vor.u32 %v3290_v5, %v3289_v44 }
 0x4e6   :  { %3366 = vmatmul.mubr.msk.bf16.vlgmr.msra.gmra.mxu0 %vm103_vm1, %v4519_v33  ;;  %3370 = vmatmul.mubr.msk.bf16.vlgmr.msra.gmra.mxu1 %vm103_vm1, %v4519_v33  ;;  %v3883_v8 = vld [vmem:[%s5085_s6 + $0x80] sm:$0xff]  }
 0x4e7   :  { %1647 = vmatpush1.bf16.msra.mxu0 %v3353_v38  ;;  %1852 = vmatpush1.bf16.msra.mxu1 %v3363_v10  ;;  %v4702_v9 = vrot.slane %v4697_v24, %v1335_v55  ;;  %v3287_v38 = vld [vmem:[%s5086_s7 + $0x5] ss:$8 sm:$0xf] }
 0x4e8   :  { %1648 = vmatprep.subr.bf16.mxu0 %v3338_v46  ;;  %1853 = vmatprep.subr.bf16.mxu1 %v3348_v13  ;;  %v3288_v10 = vld [vmem:[%s5086_s7 + $0x5] ss:$8 sm:$0xf0]  ;;  %v1315_v13 = vsub.s32 1, %v4204_v45 }
 0x4e9   :  { %1666 = vmatprep.mubr.bf16.mxu0 %v4080_v12  ;;  %1871 = vmatprep.mubr.bf16.mxu1 %v4080_v12  ;;  %v4713_v46 = vor.u32 %v3288_v10, %v3287_v38  ;;  %v3889_v5 = vld [vmem:[%s5085_s6 + $0x160] sm:$0xff]  }
 0x4eb   :  { %1649 = vmatpush1.bf16.msra.mxu0 %v3337_v17  ;;  %1854 = vmatpush1.bf16.msra.mxu1 %v3347_v22  ;;  %v1312_v14 = vrot.slane %v4713_v46, %v4217_v58  ;;  %v1316_v11 = vrot.slane %v4713_v46, %v1315_v13  ;;  %v1340_v42 = vrot.slane %v4713_v46, %v1339_v19 }
 0x4ec   :  { %1728 = vmatprep.subr.bf16.mxu0 %v3358_v59  ;;  %3558 = vmatprep.subr.bf16.mxu1 %v3854_v26  ;;  %v1319_v26 = vsub.s32 2, %v4204_v45 }
 0x4ee   :  { %3367 = vmatmul.mubr.msk.bf16.vlgmr.msra.gmra.mxu0 %vm103_vm1, %v4519_v33  ;;  %3372 = vmatmul.mubr.msk.bf16.vlgmr.msra.gmra.mxu1 %vm103_vm1, %v4519_v33 }
 0x4ef   :  { %1729 = vmatpush1.bf16.msra.mxu0 %v3357_v23  ;;  %1748 = vmatprep.mubr.bf16.mxu0 %v4080_v12 }
 0x4f0   :  { %1730 = vmatprep.subr.bf16.mxu0 %v3342_v27  ;;  %3559 = vmatpush3.bf16.msra.mxu1 %v3856_v28  ;;  %v1323_v28 = vsub.s32 3, %v4204_v45 }
 0x4f1   :  { %3560 = vmatprep.subr.bf16.mxu1 %v3858_v62 }
 0x4f3   :  { %1731 = vmatpush1.bf16.msra.mxu0 %v3341_v7 }
 0x4f4   :  { %1810 = vmatprep.subr.bf16.mxu0 %v3362_v30  ;;  %3561 = vmatpush3.bf16.msra.mxu1 %v3860_v31  ;;  %v1320_v30 = vrot.slane %v4713_v46, %v1319_v26  ;;  %v1352_v31 = vrot.slane %v4697_v24, %v1319_v26  ;;  %v3893_v26 = vld [vmem:[%s5085_s6 + $0x158] sm:$0xff]  }
 0x4f5   :  { %3562 = vmatprep.subr.bf16.mxu1 %v3862_v56 }
 0x4f6   :  { %3369 = vmatmul.mubr.msk.bf16.vlgmr.msra.gmra.mxu0 %vm103_vm1, %v4519_v33 }
 0x4f7   :  { %1811 = vmatpush1.bf16.msra.mxu0 %v3361_v0  ;;  %1830 = vmatprep.mubr.bf16.mxu0 %v4080_v12  ;;  %v3851_v12 = vld [vmem:[%s5085_s6 + $0x70] sm:$0xff]  }
 0x4f8   :  { %1812 = vmatprep.subr.bf16.mxu0 %v3346_v32  ;;  %3563 = vmatpush3.bf16.msra.mxu1 %v3864_v34  ;;  %v1324_v32 = vrot.slane %v4713_v46, %v1323_v28  ;;  %v3880_v34 = vld [vmem:[%s5085_s6 + $0x138] sm:$0xff]  }
 0x4f9   :  { %3564 = vmatprep.subr.bf16.mxu1 %v3866_v15 }
 0x4fb   :  { %1813 = vmatpush1.bf16.msra.mxu0 %v3345_v18 }
 0x4fc   :  { %3536 = vmatprep.subr.bf16.mxu0 %v3849_v37  ;;  %3565 = vmatpush3.bf16.msra.mxu1 %v3868_v40  ;;  %v3882_v40 = vld [vmem:[%s5085_s6 + $0x170] sm:$0xff]  }
 0x4fd   :  { %3566 = vmatprep.subr.bf16.mxu1 %v3870_v57 }
 0x4fe   :  { %3371 = vmatmul.mubr.msk.bf16.vlgmr.msra.gmra.mxu0 %vm103_vm1, %v4519_v33  ;;  %v3873_v33 = vld [vmem:[%s5085_s6 + $0x40] sm:$0xff]  }
 0x4ff   :  { %3537 = vmatpush3.bf16.msra.mxu0 %v3850_v43 }
 0x500   :  { %3538 = vmatprep.subr.bf16.mxu0 %v3851_v12  ;;  %3567 = vmatpush3.bf16.msra.mxu1 %v3872_v61 }
 0x501   :  { %3568 = vmatprep.subr.bf16.mxu1 %v3874_v2 }
 0x503   :  { %3539 = vmatpush3.bf16.msra.mxu0 %v3852_v20 }
 0x504   :  { %3540 = vmatprep.subr.bf16.mxu0 %v3853_v49  ;;  %3569 = vmatpush3.bf16.msra.mxu1 %v3876_v3  ;;  %v3887_v3 = vld [vmem:[%s5085_s6 + $0x128] sm:$0xff]  }
 0x505   :  { %3570 = vmatprep.subr.bf16.mxu1 %v3877_v1  ;;  %v3888_v1 = vld [vmem:[%s5085_s6 + $0x1b8] sm:$0xff]  }
 0x507   :  { %3541 = vmatpush3.bf16.msra.mxu0 %v3855_v21 }
 0x508   :  { %3542 = vmatprep.subr.bf16.mxu0 %v3857_v25  ;;  %3571 = vmatpush3.bf16.msra.mxu1 %v3879_v4 }
 0x509   :  { %3572 = vmatprep.subr.bf16.mxu1 %v3881_v6 }
 0x50b   :  { %3543 = vmatpush3.bf16.msra.mxu0 %v3859_v36  ;;  %v3884_v36 = vld [vmem:[%s5085_s6 + $0x130] sm:$0xff]  }
 0x50c   :  { %3544 = vmatprep.subr.bf16.mxu0 %v3861_v41  ;;  %3573 = vmatpush3.bf16.msra.mxu1 %v3883_v8  ;;  %v1331_v41 = vsub.s32 5, %v4204_v45  ;;  %v3890_v8 = vld [vmem:[%s5085_s6 + $0x1f0] sm:$0xff]  }
 0x50d   :  { %3602 = vmatprep.subr.bf16.mxu1 %v3886_v48 }
 0x50f   :  { %3545 = vmatpush3.bf16.msra.mxu0 %v3863_v47 }
 0x510   :  { %3546 = vmatprep.subr.bf16.mxu0 %v3865_v51 }
 0x513   :  { %3547 = vmatpush3.bf16.msra.mxu0 %v3867_v52 }
 0x514   :  { %3548 = vmatprep.subr.bf16.mxu0 %v3869_v53  ;;  %v3885_v53 = vld [vmem:[%s5085_s6 + $0x168] sm:$0xff]  }
 0x517   :  { %3549 = vmatpush3.bf16.msra.mxu0 %v3871_v60 }
 0x518   :  { %3550 = vmatprep.subr.bf16.mxu0 %v3873_v33 }
 0x51b   :  { %3551 = vmatpush3.bf16.msra.mxu0 %v3875_v39  ;;  %v1332_v39 = vrot.slane %v4713_v46, %v1331_v41 }
 0x51c   :  { %3580 = vmatprep.subr.bf16.mxu0 %v3878_v35 }
 0x59e   :  { %v1586_v17 = vpop.f32.mrf.mxu0  ;;  %v4721_v22 = vpop.f32.mrf.mxu1 }
 0x59f   :  { %v1587_v59 = vadd.f32 %v1586_v17, %v1312_v14 }
 0x5a0   :  { %v1588_v16 = vpop.f32.mrf.mxu0  ;;  %v1711_v23 = vpop.f32.mrf.mxu1 }
 0x5a1   :  { %v1589_v27 = vadd.f32 %v1588_v16, %v1316_v11  ;;  %v1880_v54 = vmax.f32 %v1587_v59, 0.0  ;;  %v1712_v20 = vadd.f32 %v1711_v23, %v1340_v42  ;;  %v3891_v11 = vld [vmem:[%s5085_s6 + $0x120] sm:$0xff]   ;;  %v3894_v16 = vld [vmem:[%s5085_s6 + $0x1e8] sm:$0xff]   ;;  %v3897_v42 = vld [vmem:[%s5085_s6 + $0x150] sm:$0xff]  }
 0x5a2   :  { %v1590_v29 = vpop.f32.mrf.mxu0  ;;  %v1713_v62 = vpop.f32.mrf.mxu1 }
 0x5a3   :  { %v1881_v7 = vmax.f32 %v1589_v27, 0.0  ;;  %v1896_v15 = vpack.c.bf16 %v1880_v54, %v1880_v54  ;;  %v1887_v60 = vmax.f32 %v1712_v20, 0.0  ;;  %v3895_v62 = vld [vmem:[%s5085_s6 + $0x118] sm:$0xff]  }
 0x5a4   :  { %v1591_v50 = vpop.f32.mrf.mxu0  ;;  %v1714_v56 = vpop.f32.mrf.mxu1 }
 0x5a5   :  { %v1897_v0 = vpack.c.bf16 %v1881_v7, %v1881_v7  ;;  %v1903_v48 = vpack.c.bf16 %v1887_v60, %v1887_v60  ;;  %v3896_v7 = vld [vmem:[%s5085_s6 + $0x1a8] sm:$0xff]   ;;  %v3898_v50 = vld [vmem:[%s5085_s6 + $0x1e0] sm:$0xff]  }
 0x5a6   :  { %v1627_v18 = vpop.f32.mrf.mxu0  ;;  %v1791_v37 = vpop.f32.mrf.mxu1  ;;  %v3907_v60 = vld [vmem:[%s5085_s6 + $0x100] sm:$0xff]  }
 0x5a7   :  { %v1628_v43 = vadd.f32 %v1627_v18, %v1320_v30  ;;  %v4740_v12 = vadd.f32 %v1791_v37, %v1352_v31  ;;  %2968 = vmatprep.mubr.bf16.mxu0 %v1897_v0  ;;  %v1327_v30 = vsub.s32 4, %v4204_v45  ;;  %v3899_v0 = vld [vmem:[%s5085_s6 + $0x110] sm:$0xff]   ;;  %v3901_v18 = vld [vmem:[%s5085_s6 + $0x148] sm:$0xff]   ;;  %v3902_v37 = vld [vmem:[%s5085_s6 + $0x1d8] sm:$0xff]  }
 0x5a8   :  { %v1629_v49 = vpop.f32.mrf.mxu0  ;;  %v4742_v21 = vpop.f32.mrf.mxu1  ;;  %2969 = vmatmul.mubr.bf16.vlgmr.msra.gmra.mxu0 %v1896_v15  ;;  %v3945_v45 = vld [vmem:[%s5085_s6 + $0x2c0] sm:$0xff]  }
 0x5a9   :  { %v1630_v25 = vadd.f32 %v1629_v49, %v1324_v32  ;;  %3581 = vmatpush3.bf16.msra.mxu0 %v3880_v34  ;;  %v1882_v47 = vmax.f32 %v1628_v43, 0.0  ;;  %v3900_v32 = vld [vmem:[%s5085_s6 + $0x1a0] sm:$0xff]   ;;  %v1328_v34 = vrot.slane %v4713_v46, %v1327_v30  ;;  %v1348_v43 = vrot.slane %v4697_v24, %v1315_v13  ;;  %v3903_v49 = vld [vmem:[%s5085_s6 + $0x108] sm:$0xff]   ;;  %v3906_v13 = vld [vmem:[%s5085_s6 + $0x1d0] sm:$0xff]  }
 0x5aa   :  { %v1631_v51 = vpop.f32.mrf.mxu0  ;;  %v1795_v52 = vpop.f32.mrf.mxu1  ;;  %3582 = vmatprep.subr.bf16.mxu0 %v3882_v40  ;;  %v1360_v40 = vrot.slane %v4697_v24, %v1327_v30  ;;  %v3925_v30 = vld [vmem:[%s5085_s6 + $0x258] sm:$0xff]  }
 0x5ab   :  { %v1883_v57 = vmax.f32 %v1630_v25, 0.0  ;;  %v1898_v35 = vpack.c.bf16 %v1882_v47, %v1882_v47  ;;  %v3904_v25 = vld [vmem:[%s5085_s6 + $0x198] sm:$0xff]   ;;  %v3905_v51 = vld [vmem:[%s5085_s6 + $0x140] sm:$0xff]  }
 0x5ac   :  { %v1632_v61 = vpop.f32.mrf.mxu0  ;;  %v1796_v33 = vpop.f32.mrf.mxu1 }
 0x5ad   :  { %v1899_v2 = vpack.c.bf16 %v1883_v57, %v1883_v57  ;;  %3583 = vmatpush3.bf16.msra.mxu0 %v3884_v36  ;;  %v3908_v61 = vld [vmem:[%s5085_s6 + $0x190] sm:$0xff]   ;;  %v1336_v33 = vrot.slane %v4713_v46, %v1335_v55  ;;  %v3911_v55 = vld [vmem:[%s5085_s6 + $0x188] sm:$0xff]   ;;  %v3912_v46 = vld [vmem:[%s5085_s6 + $0x238] sm:$0xff]  }
 0x5ae   :  { %v1668_v4 = vpop.f32.mrf.mxu0  ;;  %v1873_v44 = vpop.f32.mrf.mxu1  ;;  %3584 = vmatprep.subr.bf16.mxu0 %v3885_v53 }
 0x5af   :  { %v4764_v6 = vadd.f32 %v1873_v44, %v4702_v9  ;;  %3008 = vmatprep.mubr.bf16.mxu1 %v1899_v2  ;;  %v3892_v9 = vld [vmem:[%s5085_s6 + $0x1b0] sm:$0xff]   ;;  %v1669_v36 = vadd.f32 %v1668_v4, %v1328_v34 }
 0x5b0   :  { %v1670_v38 = vpop.f32.mrf.mxu0  ;;  %v4769_v10 = vpop.f32.mrf.mxu1  ;;  %3009 = vmatmul.mubr.bf16.vlgmr.msra.gmra.mxu1 %v1898_v35  ;;  %v1356_v35 = vrot.slane %v4697_v24, %v1323_v28  ;;  %v3913_v28 = vld [vmem:[%s5085_s6 + $0x1c0] sm:$0xff]   ;;  %v3931_v34 = vld [vmem:[%s5085_s6 + $0x210] sm:$0xff]  }
 0x5b1   :  { %v1671_v14 = vadd.f32 %v1670_v38, %v1332_v39  ;;  %3585 = vmatpush3.bf16.msra.mxu0 %v3887_v3  ;;  %3603 = vmatpush3.bf16.msra.mxu1 %v3888_v1  ;;  %v1884_v2 = vmax.f32 %v1669_v36, 0.0  ;;  %v3909_v3 = vld [vmem:[%s5085_s6 + $0x1c8] sm:$0xff]   ;;  %v3910_v1 = vld [vmem:[%s5085_s6 + $0x278] sm:$0xff]  }
 0x5b2   :  { %3088 = vmatprep.mubr.bf16.mxu1 %v1903_v48  ;;  %v1672_v17 = vpop.f32.mrf.mxu0  ;;  %v1877_v59 = vpop.f32.mrf.mxu1  ;;  %3586 = vmatprep.subr.bf16.mxu0 %v3889_v5  ;;  %v1710_v5 = vadd.f32 %v4721_v22, %v1336_v33  ;;  %v3914_v48 = vld [vmem:[%s5085_s6 + $0x270] sm:$0xff]   ;;  %v1794_v38 = vadd.f32 %v4742_v21, %v1356_v35  ;;  %v3915_v22 = vld [vmem:[%s5085_s6 + $0x180] sm:$0xff]   ;;  %v3918_v21 = vld [vmem:[%s5085_s6 + $0x2f8] sm:$0xff]   ;;  %v1890_v35 = vmax.f32 %v4740_v12, 0.0 }
 0x5b3   :  { %v1885_v23 = vmax.f32 %v1671_v14, 0.0  ;;  %3604 = vmatprep.subr.bf16.mxu1 %v3890_v8  ;;  %v1900_v8 = vpack.c.bf16 %v1884_v2, %v1884_v2  ;;  %v3917_v17 = vld [vmem:[%s5085_s6 + $0x268] sm:$0xff]   ;;  %v3944_v33 = vld [vmem:[%s5085_s6 + $0x338] sm:$0xff]  }
 0x5b4   :  { %v1673_v27 = vpop.f32.mrf.mxu0  ;;  %v1878_v54 = vpop.f32.mrf.mxu1  ;;  %v1891_v59 = vmax.f32 %v1794_v38, 0.0  ;;  %v3952_v12 = vld [vmem:[%s5085_s6 + $0x3b8] sm:$0xff]   ;;  %v3956_v38 = vld [vmem:[%s5085_s6 + $0x3b0] sm:$0xff]  }
 0x5b5   :  { %v1901_v29 = vpack.c.bf16 %v1885_v23, %v1885_v23  ;;  %3587 = vmatpush3.bf16.msra.mxu0 %v3891_v11  ;;  %3605 = vmatpush3.bf16.msra.mxu1 %v3892_v9  ;;  %v3916_v11 = vld [vmem:[%s5085_s6 + $0x230] sm:$0xff]   ;;  %v1886_v9 = vmax.f32 %v1710_v5, 0.0  ;;  %v3921_v27 = vld [vmem:[%s5085_s6 + $0x260] sm:$0xff]  }
 0x5b6   :  { %v4790_v31 = vpop.f32.mrf.mxu0  ;;  %3588 = vmatprep.subr.bf16.mxu0 %v3893_v26  ;;  %3606 = vmatprep.subr.bf16.mxu1 %v3894_v16  ;;  %v3919_v26 = vld [vmem:[%s5085_s6 + $0x228] sm:$0xff]   ;;  %v3920_v16 = vld [vmem:[%s5085_s6 + $0x2b8] sm:$0xff]   ;;  %v3922_v54 = vld [vmem:[%s5085_s6 + $0x2f0] sm:$0xff]  }
 0x5b7   :  { %3048 = vmatprep.mubr.bf16.mxu0 %v1901_v29  ;;  %v1902_v23 = vpack.c.bf16 %v1886_v9, %v1886_v9  ;;  %v1907_v29 = vpack.c.bf16 %v1891_v59, %v1891_v59  ;;  %v3953_v5 = vld [vmem:[%s5085_s6 + $0x360] sm:$0xff]   ;;  %v3960_v9 = vld [vmem:[%s5085_s6 + $0x3a8] sm:$0xff]   ;;  %v3963_v59 = vld [vmem:[%s5085_s6 + $0x310] sm:$0xff]  }
 0x5b8   :  { %v1752_v56 = vpop.f32.mrf.mxu0 }
 0x5b9   :  { %3589 = vmatpush3.bf16.msra.mxu0 %v3895_v62  ;;  %3607 = vmatpush3.bf16.msra.mxu1 %v3896_v7  ;;  %v1753_v53 = vadd.f32 %v1752_v56, %v1348_v43  ;;  %v3923_v62 = vld [vmem:[%s5085_s6 + $0x220] sm:$0xff]   ;;  %v3924_v7 = vld [vmem:[%s5085_s6 + $0x2b0] sm:$0xff]   ;;  %v3928_v56 = vld [vmem:[%s5085_s6 + $0x2a8] sm:$0xff]   ;;  %v1364_v43 = vrot.slane %v4697_v24, %v1331_v41 }
 0x5ba   :  { %v1754_v15 = vpop.f32.mrf.mxu0  ;;  %3590 = vmatprep.subr.bf16.mxu0 %v3897_v42  ;;  %3608 = vmatprep.subr.bf16.mxu1 %v3898_v50  ;;  %v3926_v42 = vld [vmem:[%s5085_s6 + $0x2e8] sm:$0xff]   ;;  %v3927_v50 = vld [vmem:[%s5085_s6 + $0x218] sm:$0xff]   ;;  %v3938_v41 = vld [vmem:[%s5085_s6 + $0x2d0] sm:$0xff]  }
 0x5bb   :  { %v1889_v4 = vmax.f32 %v1753_v53, 0.0  ;;  %v3932_v15 = vld [vmem:[%s5085_s6 + $0x2a0] sm:$0xff]   ;;  %v3942_v53 = vld [vmem:[%s5085_s6 + $0x378] sm:$0xff]  }
 0x5bc   :  { %v1755_v20 = vpop.f32.mrf.mxu0 }
 0x5bd   :  { %3591 = vmatpush3.bf16.msra.mxu0 %v3899_v0  ;;  %3609 = vmatpush3.bf16.msra.mxu1 %v3900_v32  ;;  %v1905_v14 = vpack.c.bf16 %v1889_v4, %v1889_v4  ;;  %v3929_v0 = vld [vmem:[%s5085_s6 + $0x250] sm:$0xff]   ;;  %v3930_v32 = vld [vmem:[%s5085_s6 + $0x2e0] sm:$0xff]   ;;  %v3936_v20 = vld [vmem:[%s5085_s6 + $0x298] sm:$0xff]  }
 0x5be   :  { %v1832_v47 = vpop.f32.mrf.mxu0  ;;  %3592 = vmatprep.subr.bf16.mxu0 %v3901_v18  ;;  %3610 = vmatprep.subr.bf16.mxu1 %v3902_v37  ;;  %v1344_v18 = vrot.slane %v4697_v24, %v4217_v58  ;;  %v3933_v37 = vld [vmem:[%s5085_s6 + $0x248] sm:$0xff]   ;;  %v3950_v4 = vld [vmem:[%s5085_s6 + $0x3f8] sm:$0xff]  }
 0x5bf   :  { %v4827_v52 = vadd.f32 %v1832_v47, %v1360_v40  ;;  %v3934_v40 = vld [vmem:[%s5085_s6 + $0x2d8] sm:$0xff]   ;;  %v3935_v58 = vld [vmem:[%s5085_s6 + $0x208] sm:$0xff]   ;;  %v3939_v47 = vld [vmem:[%s5085_s6 + $0x200] sm:$0xff]  }
 0x5c0   :  { %v4829_v57 = vpop.f32.mrf.mxu0 }
 0x5c1   :  { %3593 = vmatpush3.bf16.msra.mxu0 %v3903_v49  ;;  %3611 = vmatpush3.bf16.msra.mxu1 %v3904_v25  ;;  %v1751_v49 = vadd.f32 %v4790_v31, %v1344_v18  ;;  %v3937_v25 = vld [vmem:[%s5085_s6 + $0x240] sm:$0xff]   ;;  %v1835_v36 = vadd.f32 %v4829_v57, %v1364_v43  ;;  %v3940_v31 = vld [vmem:[%s5085_s6 + $0x290] sm:$0xff]   ;;  %v1372_v57 = vrot.slane %v4697_v24, %v1339_v19 }
 0x5c2   :  { %v1836_v39 = vpop.f32.mrf.mxu0  ;;  %3594 = vmatprep.subr.bf16.mxu0 %v3905_v51  ;;  %3612 = vmatprep.subr.bf16.mxu1 %v3906_v13  ;;  %v3941_v13 = vld [vmem:[%s5085_s6 + $0x2c8] sm:$0xff]   ;;  %v3946_v24 = vld [vmem:[%s5085_s6 + $0x370] sm:$0xff]  }
 0x5c3   :  { %v1888_v51 = vmax.f32 %v1751_v49, 0.0  ;;  %v1876_v19 = vadd.f32 %v4769_v10, %v1372_v57  ;;  %v3949_v10 = vld [vmem:[%s5085_s6 + $0x368] sm:$0xff]  }
 0x5c4   :  { %v1837_v44 = vpop.f32.mrf.mxu0 }
 0x5c5   :  { %3595 = vmatpush3.bf16.msra.mxu0 %v3907_v60  ;;  %3613 = vmatpush3.bf16.msra.mxu1 %v3908_v61  ;;  %v1893_v60 = vmax.f32 %v1835_v36, 0.0  ;;  %v3943_v61 = vld [vmem:[%s5085_s6 + $0x288] sm:$0xff]   ;;  %v1904_v2 = vpack.c.bf16 %v1888_v51, %v1888_v51  ;;  %v1895_v44 = vmax.f32 %v1876_v19, 0.0 }
 0x5c6   :  { %3614 = vmatprep.subr.bf16.mxu1 %v3909_v3  ;;  %3624 = vmatprep.subr.bf16.mxu0 %v3910_v1  ;;  %v3947_v3 = vld [vmem:[%s5085_s6 + $0x280] sm:$0xff]   ;;  %v3948_v1 = vld [vmem:[%s5085_s6 + $0x330] sm:$0xff]  }
 0x5c7   :  { %v1909_v39 = vpack.c.bf16 %v1893_v60, %v1893_v60 }
 0x5c8   :  { %3049 = vmatmul.mubr.bf16.vlgmr.msra.gmra.mxu0 %v1900_v8  ;;  %v3954_v8 = vld [vmem:[%s5085_s6 + $0x3f0] sm:$0xff]  }
 0x5c9   :  { %3615 = vmatpush3.bf16.msra.mxu1 %v3911_v55  ;;  %3625 = vmatpush3.bf16.msra.mxu0 %v3912_v46  ;;  %v3951_v55 = vld [vmem:[%s5085_s6 + $0x328] sm:$0xff]   ;;  %v1906_v46 = vpack.c.bf16 %v1890_v35, %v1890_v35 }
 0x5ca   :  { %3128 = vmatprep.mubr.bf16.mxu0 %v1905_v14  ;;  %3616 = vmatprep.subr.bf16.mxu1 %v3913_v28  ;;  %v1911_v28 = vpack.c.bf16 %v1895_v44, %v1895_v44  ;;  %v3957_v14 = vld [vmem:[%s5085_s6 + $0x358] sm:$0xff]  }
 0x5cb   :  { %3626 = vmatprep.subr.bf16.mxu0 %v3914_v48  ;;  %v3955_v48 = vld [vmem:[%s5085_s6 + $0x320] sm:$0xff]  }
 0x5cd   :  { %3617 = vmatpush3.bf16.msra.mxu1 %v3915_v22  ;;  %3627 = vmatpush3.bf16.msra.mxu0 %v3916_v11  ;;  %v3958_v22 = vld [vmem:[%s5085_s6 + $0x3e8] sm:$0xff]   ;;  %v3959_v11 = vld [vmem:[%s5085_s6 + $0x318] sm:$0xff]  }
 0x5ce   :  { %3628 = vmatprep.subr.bf16.mxu0 %v3917_v17  ;;  %3646 = vmatprep.subr.bf16.mxu1 %v3918_v21  ;;  %v3961_v17 = vld [vmem:[%s5085_s6 + $0x350] sm:$0xff]   ;;  %v3962_v21 = vld [vmem:[%s5085_s6 + $0x3e0] sm:$0xff]  }
 0x5d0   :  { %3089 = vmatmul.mubr.bf16.vlgmr.msra.gmra.mxu1 %v1902_v23  ;;  %v3966_v23 = vld [vmem:[%s5085_s6 + $0x3d8] sm:$0xff]  }
 0x5d1   :  { %3629 = vmatpush3.bf16.msra.mxu0 %v3919_v26  ;;  %3647 = vmatpush3.bf16.msra.mxu1 %v3920_v16  ;;  %v3964_v26 = vld [vmem:[%s5085_s6 + $0x3a0] sm:$0xff]   ;;  %v3965_v16 = vld [vmem:[%s5085_s6 + $0x348] sm:$0xff]  }
 0x5d2   :  { %3168 = vmatprep.mubr.bf16.mxu1 %v1907_v29  ;;  %3630 = vmatprep.subr.bf16.mxu0 %v3921_v27  ;;  %v3967_v27 = vld [vmem:[%s5085_s6 + $0x308] sm:$0xff]   ;;  %v3969_v29 = vld [vmem:[%s5085_s6 + $0x340] sm:$0xff]  }
 0x5d3   :  { %3648 = vmatprep.subr.bf16.mxu1 %v3922_v54  ;;  %v3968_v54 = vld [vmem:[%s5085_s6 + $0x398] sm:$0xff]  }
 0x5d5   :  { %3631 = vmatpush3.bf16.msra.mxu0 %v3923_v62  ;;  %3649 = vmatpush3.bf16.msra.mxu1 %v3924_v7  ;;  %v3970_v62 = vld [vmem:[%s5085_s6 + $0x3d0] sm:$0xff]   ;;  %v3971_v7 = vld [vmem:[%s5085_s6 + $0x300] sm:$0xff]  }
 0x5d6   :  { %3632 = vmatprep.subr.bf16.mxu0 %v3925_v30  ;;  %3650 = vmatprep.subr.bf16.mxu1 %v3926_v42  ;;  %v3972_v30 = vld [vmem:[%s5085_s6 + $0x390] sm:$0xff]   ;;  %v1892_v42 = vmax.f32 %v4827_v52, 0.0  ;;  %v3976_v52 = vld [vmem:[%s5085_s6 + $0x380] sm:$0xff]  }
 0x5d9   :  { %3633 = vmatpush3.bf16.msra.mxu0 %v3927_v50  ;;  %3651 = vmatpush3.bf16.msra.mxu1 %v3928_v56  ;;  %v3973_v50 = vld [vmem:[%s5085_s6 + $0x3c8] sm:$0xff]  }
 0x5da   :  { %3634 = vmatprep.subr.bf16.mxu0 %v3929_v0  ;;  %3652 = vmatprep.subr.bf16.mxu1 %v3930_v32  ;;  %v3974_v56 = vld [vmem:[%s5085_s6 + $0x388] sm:$0xff]   ;;  %v1908_v0 = vpack.c.bf16 %v1892_v42, %v1892_v42  ;;  %v3975_v32 = vld [vmem:[%s5085_s6 + $0x3c0] sm:$0xff]  }
 0x5dd   :  { %3635 = vmatpush3.bf16.msra.mxu0 %v3931_v34  ;;  %3653 = vmatpush3.bf16.msra.mxu1 %v3932_v15  ;;  %v1894_v34 = vmax.f32 %v4764_v6, 0.0 }
 0x5de   :  { %3636 = vmatprep.subr.bf16.mxu0 %v3933_v37  ;;  %3654 = vmatprep.subr.bf16.mxu1 %v3934_v40 }
 0x5df   :  { %v1910_v15 = vpack.c.bf16 %v1894_v34, %v1894_v34  ;;  %v85_v34 = vld [vmem:[%s5086_s7 + $0x80] ss:$0 sm:$0xff] }
 0x5e1   :  { %3637 = vmatpush3.bf16.msra.mxu0 %v3935_v58  ;;  %3655 = vmatpush3.bf16.msra.mxu1 %v3936_v20  ;;  %v83_v20 = vld [vmem:[%s5086_s7 + $0x6] ss:$0 sm:$0xff] }
 0x5e2   :  { %3638 = vmatprep.subr.bf16.mxu0 %v3937_v25  ;;  %3656 = vmatprep.subr.bf16.mxu1 %v3938_v41 }
 0x5e5   :  { %3639 = vmatpush3.bf16.msra.mxu0 %v3939_v47  ;;  %3657 = vmatpush3.bf16.msra.mxu1 %v3940_v31 }
 0x5e6   :  { %3658 = vmatprep.subr.bf16.mxu1 %v3941_v13  ;;  %3668 = vmatprep.subr.bf16.mxu0 %v3942_v53 }
 0x5e8   :  { %3129 = vmatmul.mubr.bf16.vlgmr.msra.gmra.mxu0 %v1904_v2 }
 0x5e9   :  { %3659 = vmatpush3.bf16.msra.mxu1 %v3943_v61  ;;  %3669 = vmatpush3.bf16.msra.mxu0 %v3944_v33 }
 0x5ea   :  { %3208 = vmatprep.mubr.bf16.mxu0 %v1909_v39  ;;  %3660 = vmatprep.subr.bf16.mxu1 %v3945_v45 }
 0x5eb   :  { %3670 = vmatprep.subr.bf16.mxu0 %v3946_v24 }
 0x5ed   :  { %3661 = vmatpush3.bf16.msra.mxu1 %v3947_v3  ;;  %3671 = vmatpush3.bf16.msra.mxu0 %v3948_v1 }
 0x5ee   :  { %3672 = vmatprep.subr.bf16.mxu0 %v3949_v10  ;;  %3690 = vmatprep.subr.bf16.mxu1 %v3950_v4 }
 0x5f0   :  { %3169 = vmatmul.mubr.bf16.vlgmr.msra.gmra.mxu1 %v1906_v46 }
 0x5f1   :  { %3673 = vmatpush3.bf16.msra.mxu0 %v3951_v55  ;;  %3691 = vmatpush3.bf16.msra.mxu1 %v3952_v12 }
 0x5f2   :  { %3248 = vmatprep.mubr.bf16.mxu1 %v1911_v28  ;;  %3674 = vmatprep.subr.bf16.mxu0 %v3953_v5 }
 0x5f3   :  { %3692 = vmatprep.subr.bf16.mxu1 %v3954_v8 }
 0x5f5   :  { %3675 = vmatpush3.bf16.msra.mxu0 %v3955_v48  ;;  %3693 = vmatpush3.bf16.msra.mxu1 %v3956_v38 }
 0x5f6   :  { %3676 = vmatprep.subr.bf16.mxu0 %v3957_v14  ;;  %3694 = vmatprep.subr.bf16.mxu1 %v3958_v22 }
 0x5f9   :  { %3677 = vmatpush3.bf16.msra.mxu0 %v3959_v11  ;;  %3695 = vmatpush3.bf16.msra.mxu1 %v3960_v9 }
 0x5fa   :  { %3678 = vmatprep.subr.bf16.mxu0 %v3961_v17  ;;  %3696 = vmatprep.subr.bf16.mxu1 %v3962_v21 }
 0x5fd   :  { %3679 = vmatpush3.bf16.msra.mxu0 %v3963_v59  ;;  %3697 = vmatpush3.bf16.msra.mxu1 %v3964_v26 }
 0x5fe   :  { %3680 = vmatprep.subr.bf16.mxu0 %v3965_v16  ;;  %3698 = vmatprep.subr.bf16.mxu1 %v3966_v23 }
 0x601   :  { %3681 = vmatpush3.bf16.msra.mxu0 %v3967_v27  ;;  %3699 = vmatpush3.bf16.msra.mxu1 %v3968_v54 }
 0x602   :  { %3682 = vmatprep.subr.bf16.mxu0 %v3969_v29  ;;  %3700 = vmatprep.subr.bf16.mxu1 %v3970_v62 }
 0x605   :  { %3683 = vmatpush3.bf16.msra.mxu0 %v3971_v7  ;;  %3701 = vmatpush3.bf16.msra.mxu1 %v3972_v30 }
 0x606   :  { %3702 = vmatprep.subr.bf16.mxu1 %v3973_v50 }
 0x608   :  { %3209 = vmatmul.mubr.bf16.vlgmr.msra.gmra.mxu0 %v1908_v0 }
 0x609   :  { %3703 = vmatpush3.bf16.msra.mxu1 %v3974_v56 }
 0x60a   :  { %3704 = vmatprep.subr.bf16.mxu1 %v3975_v32 }
 0x60d   :  { %3705 = vmatpush3.bf16.msra.mxu1 %v3976_v52  ;;  %v84_v52 = vld [vmem:[%s5086_s7 + $0x7] ss:$0 sm:$0xff] }
 0x610   :  { %3249 = vmatmul.mubr.bf16.vlgmr.msra.gmra.mxu1 %v1910_v15 }
 0x668   :  { %v3552_v18 = vpop.f32.mrf.mxu0 }
 0x66a   :  { %v3553_v37 = vpop.f32.mrf.mxu0 }
 0x66b   :  { %v3554_v40 = vadd.f32 %v3553_v37, %v3552_v18 }
 0x66c   :  { %v3555_v43 = vpop.f32.mrf.mxu0 }
 0x66d   :  { %v2971_v41 = vadd.f32 %v3554_v40, %v83_v20 }
 0x66e   :  { %v3556_v58 = vpop.f32.mrf.mxu0 }
 0x670   :  { %v3574_v49 = vpop.f32.mrf.mxu1 }
 0x672   :  { %v3575_v25 = vpop.f32.mrf.mxu1 }
 0x673   :  { %v3576_v36 = vadd.f32 %v3575_v25, %v3574_v49 }
 0x674   :  { %v3577_v47 = vpop.f32.mrf.mxu1 }
 0x675   :  { %v3011_v31 = vadd.f32 %v3576_v36, %v2971_v41 }
 0x676   :  { %v3578_v6 = vpop.f32.mrf.mxu1 }
 0x688   :  { %v3596_v51 = vpop.f32.mrf.mxu0 }
 0x68a   :  { %v3597_v13 = vpop.f32.mrf.mxu0 }
 0x68b   :  { %v3598_v53 = vadd.f32 %v3597_v13, %v3596_v51 }
 0x68c   :  { %v3599_v57 = vpop.f32.mrf.mxu0 }
 0x68d   :  { %v3051_v60 = vadd.f32 %v3598_v53, %v3011_v31 }
 0x68e   :  { %v3600_v61 = vpop.f32.mrf.mxu0 }
 0x690   :  { %v3618_v33 = vpop.f32.mrf.mxu1 }
 0x692   :  { %v3619_v2 = vpop.f32.mrf.mxu1 }
 0x693   :  { %v3620_v12 = vadd.f32 %v3619_v2, %v3618_v33 }
 0x694   :  { %v3621_v45 = vpop.f32.mrf.mxu1 }
 0x695   :  { %v3091_v28 = vadd.f32 %v3620_v12, %v3051_v60 }
 0x696   :  { %v3622_v24 = vpop.f32.mrf.mxu1 }
 0x6a8   :  { %v3640_v19 = vpop.f32.mrf.mxu0 }
 0x6aa   :  { %v3641_v39 = vpop.f32.mrf.mxu0 }
 0x6ab   :  { %v3642_v5 = vadd.f32 %v3641_v39, %v3640_v19 }
 0x6ac   :  { %v3643_v3 = vpop.f32.mrf.mxu0 }
 0x6ad   :  { %v3131_v14 = vadd.f32 %v3642_v5, %v3091_v28 }
 0x6ae   :  { %v3644_v1 = vpop.f32.mrf.mxu0 }
 0x6b0   :  { %v3662_v35 = vpop.f32.mrf.mxu1 }
 0x6b2   :  { %v3663_v10 = vpop.f32.mrf.mxu1 }
 0x6b3   :  { %v3664_v48 = vadd.f32 %v3663_v10, %v3662_v35 }
 0x6b4   :  { %v3665_v4 = vpop.f32.mrf.mxu1 }
 0x6b5   :  { %v3171_v9 = vadd.f32 %v3664_v48, %v3131_v14 }
 0x6b6   :  { %v3666_v44 = vpop.f32.mrf.mxu1 }
 0x6c8   :  { %v3684_v55 = vpop.f32.mrf.mxu0 }
 0x6ca   :  { %v3685_v46 = vpop.f32.mrf.mxu0 }
 0x6cb   :  { %v3686_v22 = vadd.f32 %v3685_v46, %v3684_v55 }
 0x6cc   :  { %v3687_v8 = vpop.f32.mrf.mxu0 }
 0x6cd   :  { %v3211_v21 = vadd.f32 %v3686_v22, %v3171_v9 }
 0x6ce   :  { %v3688_v38 = vpop.f32.mrf.mxu0 }
 0x6d0   :  { %v3706_v11 = vpop.f32.mrf.mxu1 }
 0x6d2   :  { %v3707_v17 = vpop.f32.mrf.mxu1 }
 0x6d3   :  { %v3708_v59 = vadd.f32 %v3707_v17, %v3706_v11 }
 0x6d4   :  { %v3709_v26 = vpop.f32.mrf.mxu1 }
 0x6d5   :  { %v3251_v16 = vadd.f32 %v3708_v59, %v3211_v21 }
 0x6d6   :  { %v3710_v23 = vpop.f32.mrf.mxu1 }
 0x6d7   :  { %v3256_v27 = vadd.f32 %v3251_v16, %v4515_v63 }
 0x6d9   :  { %v3257_v54 = vsel %vm103_vm1, %v3256_v27, 0.0 }
 0x6da   :  { %3258 = vadd.xlane.f32.xlu0 %v3257_v54 }
 0x763   :  { %v3259_v29 = vpop.xlane.xlu0 %3258 }
 0x764   :  { %v3260_v62 = vmul.f32 0.03125, %v3259_v29 }
 0x766   :  { %v3261_v7 = vsub.f32 %v3256_v27, %v3260_v62 }
 0x768   :  { %v3262_v30 = vmul.f32 %v3261_v7, %v3261_v7 }
 0x76a   :  { %v3263_v42 = vsel %vm103_vm1, %v3262_v30, 0.0 }
 0x76b   :  { %3264 = vadd.xlane.f32.xlu0 %v3263_v42 }
 0x7f4   :  { %v3265_v50 = vpop.xlane.xlu0 %3264 }
 0x7f5   :  { %v3266_v56 = vmul.f32 0.03125, %v3265_v50 }
 0x7f7   :  { %v3267_v0 = vadd.f32 1e-05, %v3266_v56 }
 0x7f9   :  { %4035 = vrsqrt.f32 %v3267_v0 }
 0x806   :  { %v4036_v32 = vpop.eup %4035 }
 0x807   :  { %v3269_v63 = vmul.f32 %v4036_v32, %v3261_v7 }
 0x809   :  { %v3270_v15 = vmul.f32 %v3269_v63, %v84_v52 }
 0x80b   :  { %v3271_v18 = vadd.f32 %v3270_v15, %v85_v34 }
 0x80d   :  { %3272 = vst.msk [vmem:[#allocation2] sm:$0xff] %vm103_vm1, %v3271_v18 }
 0x80e   :  { %4065 = shalt.err (!%p4062_p4)
}
 0x80f   :  { %3282 = dma.vmem_to_hbm [thread:$0]  %s3280_s1, 128, %s5089_s10, [#allocation3]  }
 0x810   :  { %4074 = dma.done.wait [#allocation3], 128  }
 0x811   :  { %4075 = vsyncadd [#allocation3], 4294967168 }
 0x812   :  { %3286 = vsyncpa [#allocation3], 1 }

</bundles_post_ra>
